<compile_context>
chip_gen: v7x
topology: tpu7x:2x2x1
jax: 0.10.0
libtpu: 0.0.40
codegen_flags: <defaults>
</compile_context>

<pallas_src>
import math
import numpy as np
import jax
import jax.numpy as jnp
from jax import lax
from jax.experimental import pallas as pl
from jax.experimental.pallas import tpu as pltpu


def _cdiv_pos(a, b):
    return -(-a // b)


# ---------------------------------------------------------------------------
# One-time probe: do sublane-strided ref loads (ref[pl.ds(start, n, stride=r)])
# lower cleanly?  Mirrors the exact access pattern used by the main kernel.
# ---------------------------------------------------------------------------
_STRIDED_OK = None


def _strided_loads_supported():
    global _STRIDED_OK
    if _STRIDED_OK is not None:
        return _STRIDED_OK

    def probe_kernel(x_ref, o_ref):
        o_ref[...] = x_ref[0, 1, pl.ds(3, 4, stride=4), :]

    try:
        x = jnp.arange(2 * 20 * 20, dtype=jnp.float32).reshape(1, 2, 20, 20)
        out = pl.pallas_call(
            probe_kernel,
            out_shape=jax.ShapeDtypeStruct((4, 20), jnp.float32),
            grid=(1,),
            in_specs=[pl.BlockSpec((1, 2, 20, 20), lambda i: (0, 0, 0, 0))],
            out_specs=pl.BlockSpec((4, 20), lambda i: (0, 0)),
        )(x)
        out = np.asarray(jax.block_until_ready(out))
        _STRIDED_OK = bool(np.allclose(out, np.asarray(x)[0, 1, 3:3 + 16:4, :]))
    except Exception:
        _STRIDED_OK = False
    return _STRIDED_OK


# ---------------------------------------------------------------------------
# Fused Pallas kernel: sampled-only depthwise conv (MXU) + compact weighted-L1
# ---------------------------------------------------------------------------
def _build_fused_call(B, C, H, W, ns_h, ns_w, span_h, kH, ratio, MTF_r, Bm,
                      use_strided):
    r = ratio

    def kernel(x_ref, l_ref, w_ref, s_ref, o_ref):
        rowsel = None
        if not use_strided:
            # 0/1 row-subsample matrix, built in-register ONCE (hoisted out of
            # the band loop -- JAX does not CSE broadcast/iota).
            ii = lax.broadcasted_iota(jnp.int32, (ns_h, span_h), 0)
            pp = lax.broadcasted_iota(jnp.int32, (ns_h, span_h), 1)
            rowsel = (pp == ii * r).astype(jnp.float32)

        total = jnp.zeros((), jnp.float32)
        for c in range(C):                         # bands folded into one block
            rb = MTF_r[c]                          # static per-band row offset
            if use_strided:
                # Only the ns_h sampled rows (sublane stride = ratio), full
                # lane width: conv + column subsampling = one MXU dot per kh.
                acc = jnp.zeros((ns_h, ns_w), jnp.float32)
                for kh in range(kH):
                    strip = x_ref[0, c, pl.ds(rb + kh, ns_h, stride=r), :]
                    acc = acc + jnp.dot(strip.astype(jnp.float32), s_ref[c, kh],
                                        preferred_element_type=jnp.float32)
            else:
                # Fallback: contiguous row windows, then MXU row subsampling.
                accr = jnp.zeros((span_h, ns_w), jnp.float32)
                for kh in range(kH):
                    win = x_ref[0, c, pl.ds(rb + kh, span_h), :]
                    accr = accr + jnp.dot(win.astype(jnp.float32), s_ref[c, kh],
                                          preferred_element_type=jnp.float32)
                acc = jnp.dot(rowsel, accr, preferred_element_type=jnp.float32)
            # Compact weighted-L1 compare: everything is (ns_h, ns_w).
            diff = w_ref[0, c] * (acc - l_ref[0, c])
            total = total + jnp.sum(jnp.abs(diff))
        o_ref[...] = jnp.full((1, 1, 128), total, jnp.float32)   # lane-dense

    w_index_map = (lambda b: (0, 0, 0, 0)) if Bm == 1 else (lambda b: (b, 0, 0, 0))
    return pl.pallas_call(
        kernel,
        out_shape=jax.ShapeDtypeStruct((B, 1, 128), jnp.float32),
        grid=(B,),
        in_specs=[
            pl.BlockSpec((1, C, H, W), lambda b: (b, 0, 0, 0)),        # outputs
            pl.BlockSpec((1, C, ns_h, ns_w), lambda b: (b, 0, 0, 0)),  # labels_s
            pl.BlockSpec((1, C, ns_h, ns_w), w_index_map),             # wn (compact)
            pl.BlockSpec((C, kH, W, ns_w), lambda b: (0, 0, 0, 0)),    # taps+colsel
        ],
        out_specs=pl.BlockSpec((1, 1, 128), lambda b: (b, 0, 0)),
        compiler_params=pltpu.CompilerParams(
            dimension_semantics=("parallel",),
            # 48 MiB fits every generation (v7x VMEM = 64 MiB physical);
            # raise toward ~100 MiB on v5e/v6e when adding bigger row tiles.
            vmem_limit_bytes=48 * 1024 * 1024),
    )


# ---------------------------------------------------------------------------
# SpectralLoss module (JAX).  Only tiny batch-independent glue stays in JAX:
# compact mask/label sampling, sum(W_) and the static tap/column-select matrix.
# ---------------------------------------------------------------------------
class SpectralLossJAX:
    def __init__(self, mtf, net_scope, pan_shape, ratio, mask=None):
        kern = np.asarray(mtf[0], dtype=np.float32)          # (kH, kW, nbands)
        self.nbands = int(kern.shape[-1])
        self.net_scope = int(net_scope)
        self.ratio = int(ratio)
        self.MTF_r = [int(v) for v in mtf[1]]
        self.MTF_c = [int(v) for v in mtf[2]]
        self.kH, self.kW = int(kern.shape[0]), int(kern.shape[1])
        self.pad = math.floor((self.kH - 1) / 2)
        w = np.moveaxis(kern, -1, 0)                         # (C, kH, kW)
        self._w_np = w
        self.weight = jnp.asarray(w)                         # pure-JAX reference
        crop = (self.net_scope + self.pad) * 2
        if mask is not None:
            self.mask = jnp.asarray(mask, jnp.float32)
        else:
            self.mask = jnp.ones(
                (1, self.nbands, pan_shape[-2] - crop, pan_shape[-1] - crop),
                dtype=jnp.float32)
        self._sel_cache = {}

    def _col_tap_matrix(self, W, ns_w):
        """(C, kH, W, ns_w): MTF taps scattered at the per-band column sampling
        offsets, so conv + column subsampling is a single MXU matmul per kh."""
        key = (W, ns_w)
        if key not in self._sel_cache:
            C, kH, kW, r = self.nbands, self.kH, self.kW, self.ratio
            sel = np.zeros((C, kH, W, ns_w), np.float32)
            j = np.arange(ns_w)
            for c in range(C):
                for kh in range(kH):
                    for kw in range(kW):
                        sel[c, kh, self.MTF_c[c] + j * r + kw, j] = self._w_np[c, kh, kw]
            self._sel_cache[key] = jnp.asarray(sel)
        return self._sel_cache[key]

    def __call__(self, outputs, labels):
        r, pad, C = self.ratio, self.pad, self.nbands
        # bf16 stays in HBM (cast per-tile inside the kernel); others -> f32.
        if outputs.dtype not in (jnp.float32, jnp.bfloat16):
            outputs = outputs.astype(jnp.float32)
        B, _, H, W = outputs.shape
        Ho, Wo = H - self.kH + 1, W - self.kW + 1
        Hl, Wl = labels.shape[2], labels.shape[3]

        # Compact strided samples (the fixed "2" offset of the reference code).
        msub = self.mask[:, :, 2::r, 2::r]
        Bm, _, ns_h, ns_w = msub.shape
        assert Bm in (1, B) and ns_h > 0 and ns_w > 0
        assert ns_h == _cdiv_pos(Hl - 2 * pad - 2, r), "mask/labels row grids disagree"
        assert ns_w == _cdiv_pos(Wl - 2 * pad - 2, r), "mask/labels col grids disagree"
        for b in range(C):
            assert _cdiv_pos(Ho - self.MTF_r[b], r) == ns_h, "bad MTF_r offset"
            assert _cdiv_pos(Wo - self.MTF_c[b], r) == ns_w, "bad MTF_c offset"
        span_h = (ns_h - 1) * r + 1

        # Compact label window (== labels[pad:-pad][2::r]); ~r^2 smaller.
        labels_s = labels[:, :, pad + 2:Hl - pad:r,
                          pad + 2:Wl - pad:r].astype(jnp.float32)
        assert labels_s.shape == (B, C, ns_h, ns_w)

        # torch.sum(W_) with the mask broadcast over the batch dimension.
        # (All-zero mask -> NaN, same behavior as the reference.)
        denom = jnp.sum(msub) * float(B // Bm)
        wn = (msub / denom).astype(jnp.float32)

        sel = self._col_tap_matrix(W, ns_w)
        fused = _build_fused_call(B, C, H, W, ns_h, ns_w, span_h, self.kH, r,
                                  self.MTF_r, Bm,
                                  use_strided=_strided_loads_supported())
        partials = fused(outputs, labels_s, wn, sel)
        return jnp.sum(partials[:, 0, 0])


# ---------------------------------------------------------------------------
# Pure-JAX reference (verification only) — mirrors the PyTorch forward exactly
# ---------------------------------------------------------------------------
def spectral_loss_ref(outputs, labels, weight, MTF_r, MTF_c, ratio, pad, mask):
    C = weight.shape[0]
    x = jax.lax.conv_general_dilated(
        outputs, weight[:, None, :, :], (1, 1), 'VALID',
        dimension_numbers=('NCHW', 'OIHW', 'NCHW'), feature_group_count=C)
    Hl, Wl = labels.shape[2], labels.shape[3]
    labels_c = labels[:, :, pad:Hl - pad, pad:Wl - pad]
    y = jnp.zeros(x.shape, jnp.float32)
    W_ = jnp.zeros(x.shape, jnp.float32)
    for b in range(C):
        sub = labels_c[:, b, 2::ratio, 2::ratio]
        y = y.at[:, b, MTF_r[b]::ratio, MTF_c[b]::ratio].set(sub)
        W_ = W_.at[:, b, MTF_r[b]::ratio, MTF_c[b]::ratio].set(
            jnp.broadcast_to(mask[:, b, 2::ratio, 2::ratio], sub.shape))
    W_ = W_ / jnp.sum(W_)
    return jnp.sum(jnp.abs(x * W_ - y * W_))


if __name__ == "__main__":
    B, C = 2, 4              # batch, spectral bands
    H = W = 20               # outputs / labels spatial size
    kH = kW = 5              # MTF kernel size -> pad = 2, conv output 16x16
    ratio = 4
    MTF_r = [2, 1, 3, 0]
    MTF_c = [2, 3, 1, 2]

    # Deterministic MTF kernel: per-band normalized Gaussian, shape (kH, kW, C).
    yy, xx = np.mgrid[-(kH // 2):kH // 2 + 1, -(kW // 2):kW // 2 + 1]
    sigmas = np.array([0.8, 1.0, 1.2, 1.5])
    kern = np.stack([np.exp(-(xx ** 2 + yy ** 2) / (2 * s ** 2)) for s in sigmas],
                    axis=-1)
    kern = (kern / kern.sum(axis=(0, 1), keepdims=True)).astype(np.float32)
    # Round taps & inputs to bf16-representable f32 so the MXU matmul path and
    # the XLA reference conv agree regardless of the MXU's f32 pass count.
    kern = np.asarray(jnp.asarray(kern).astype(jnp.bfloat16).astype(jnp.float32))

    key = jax.random.PRNGKey(0)
    k1, k2 = jax.random.split(key)
    outputs = jax.random.normal(k1, (B, C, H, W), dtype=jnp.float32)
    labels = jax.random.normal(k2, (B, C, H, W), dtype=jnp.float32)
    outputs = outputs.astype(jnp.bfloat16).astype(jnp.float32)
    labels = labels.astype(jnp.bfloat16).astype(jnp.float32)

    loss_mod = SpectralLossJAX((kern, MTF_r, MTF_c), net_scope=0,
                               pan_shape=(H, W), ratio=ratio)
    loss = jax.block_until_ready(loss_mod(outputs, labels))

    ref = spectral_loss_ref(outputs, labels, loss_mod.weight, MTF_r, MTF_c,
                            ratio, loss_mod.pad, loss_mod.mask)
    np.testing.assert_allclose(np.asarray(loss), np.asarray(ref),
                               rtol=1e-3, atol=1e-5)
    print("KERNEL_OK")
</pallas_src>

<mosaic_0001>
module attributes {stable_mosaic.version = 11 : i64} {
  func.func @probe_kernel(%arg0: i32, %arg1: memref<1x2x20x20xf32, #tpu.memory_space<vmem>>, %arg2: memref<4x20xf32, #tpu.memory_space<vmem>>) attributes {dimension_semantics = [#tpu.dimension_semantics<arbitrary>], iteration_bounds = array<i64: 1>, scalar_prefetch = 0 : i64, scratch_operands = 0 : i64, tpu.core_type = #tpu.core_type<tc>, window_params = [{pipeline_mode = #tpu.pipeline_mode<synchronous>, transform_indices = @transform_0, window_bounds = array<i64: 1, 2, 20, 20>}, {pipeline_mode = #tpu.pipeline_mode<synchronous>, transform_indices = @transform_1, window_bounds = array<i64: 4, 20>}]} {
    %c0 = arith.constant 0 : index
    %c1 = arith.constant 1 : index
    %c3 = arith.constant 3 : index
    %c0_0 = arith.constant 0 : index
    %0 = tpu.strided_load %arg1[%c0, %c1, %c3, %c0_0] {strides = array<i32: 1, 1, 4, 1>} : memref<1x2x20x20xf32, #tpu.memory_space<vmem>>, vector<1x1x4x20xf32>
    %1 = vector.shape_cast %0 : vector<1x1x4x20xf32> to vector<4x20xf32>
    %c0_1 = arith.constant 0 : index
    %c0_2 = arith.constant 0 : index
    %2 = vector.load %arg2[%c0_1, %c0_2] : memref<4x20xf32, #tpu.memory_space<vmem>>, vector<4x20xf32>
    tpu.vector_store %arg2[%c0_1, %c0_2], %1 {strides = array<i32>} : memref<4x20xf32, #tpu.memory_space<vmem>>, vector<4x20xf32>,
    return
  }
  func.func @transform_0(%arg0: i32) -> (i32, i32, i32, i32) {
    %c0_i32 = arith.constant 0 : i32
    %c0_i32_0 = arith.constant 0 : i32
    %c0_i32_1 = arith.constant 0 : i32
    %c0_i32_2 = arith.constant 0 : i32
    %c0_i32_3 = arith.constant 0 : i32
    return %c0_i32, %c0_i32_0, %c0_i32_1, %c0_i32_2 : i32, i32, i32, i32
  }
  func.func @transform_1(%arg0: i32) -> (i32, i32) {
    %c0_i32 = arith.constant 0 : i32
    %c0_i32_0 = arith.constant 0 : i32
    %c0_i32_1 = arith.constant 0 : i32
    return %c0_i32, %c0_i32_0 : i32, i32
  }
}

module attributes {stable_mosaic.version = 11 : i64} {
  func.func @kernel(%arg0: i32, %arg1: memref<1x4x20x20xf32, #tpu.memory_space<vmem>>, %arg2: memref<1x4x4x4xf32, #tpu.memory_space<vmem>>, %arg3: memref<1x4x4x4xf32, #tpu.memory_space<vmem>>, %arg4: memref<4x5x20x4xf32, #tpu.memory_space<vmem>>, %arg5: memref<1x1x128xf32, #tpu.memory_space<vmem>>) attributes {dimension_semantics = [#tpu.dimension_semantics<parallel>], iteration_bounds = array<i64: 2>, scalar_prefetch = 0 : i64, scratch_operands = 0 : i64, tpu.core_type = #tpu.core_type<tc>, window_params = [{transform_indices = @transform_0, window_bounds = array<i64: 1, 4, 20, 20>}, {transform_indices = @transform_1, window_bounds = array<i64: 1, 4, 4, 4>}, {pipeline_mode = #tpu.pipeline_mode<synchronous>, transform_indices = @transform_2, window_bounds = array<i64: 1, 4, 4, 4>}, {pipeline_mode = #tpu.pipeline_mode<synchronous>, transform_indices = @transform_3, window_bounds = array<i64: 4, 5, 20, 4>}, {transform_indices = @transform_4, window_bounds = array<i64: 1, 1, 128>}]} {
    %0 = tpu.iota {dimensions = array<i32: 0>} : vector<4x13xi32>
    %1 = tpu.iota {dimensions = array<i32: 1>} : vector<4x13xi32>
    %c4_i32 = arith.constant 4 : i32
    %2 = vector.broadcast %c4_i32 : i32 to vector<4x13xi32>
    %3 = arith.muli %0, %2 : vector<4x13xi32>
    %4 = arith.cmpi eq, %1, %3 : vector<4x13xi32>
    %5 = arith.extui %4 : vector<4x13xi1> to vector<4x13xi32>
    %6 = arith.sitofp %5 : vector<4x13xi32> to vector<4x13xf32>
    %cst = arith.constant 0.000000e+00 : f32
    %7 = vector.broadcast %cst : f32 to vector<13x4xf32>
    %c0 = arith.constant 0 : index
    %c0_0 = arith.constant 0 : index
    %c2 = arith.constant 2 : index
    %c0_1 = arith.constant 0 : index
    %8 = vector.load %arg1[%c0, %c0_0, %c2, %c0_1] : memref<1x4x20x20xf32, #tpu.memory_space<vmem>>, vector<1x1x13x20xf32>
    %9 = vector.shape_cast %8 : vector<1x1x13x20xf32> to vector<13x20xf32>
    %c0_2 = arith.constant 0 : index
    %c0_3 = arith.constant 0 : index
    %c0_4 = arith.constant 0 : index
    %c0_5 = arith.constant 0 : index
    %10 = vector.load %arg4[%c0_2, %c0_3, %c0_4, %c0_5] : memref<4x5x20x4xf32, #tpu.memory_space<vmem>>, vector<1x1x20x4xf32>
    %11 = vector.shape_cast %10 : vector<1x1x20x4xf32> to vector<20x4xf32>
    %cst_6 = arith.constant dense<0.000000e+00> : vector<13x4xf32>
    %12 = tpu.matmul %9, %11, %cst_6 {dimension_numbers = #tpu.dot_dimension_numbers<[1], [0], [0], [1], [0, 0, 1, 1], [], []>} : vector<13x20xf32>, vector<20x4xf32>, vector<13x4xf32> -> vector<13x4xf32>
    %13 = arith.addf %7, %12 : vector<13x4xf32>
    %c0_7 = arith.constant 0 : index
    %c0_8 = arith.constant 0 : index
    %c3 = arith.constant 3 : index
    %c0_9 = arith.constant 0 : index
    %14 = vector.load %arg1[%c0_7, %c0_8, %c3, %c0_9] : memref<1x4x20x20xf32, #tpu.memory_space<vmem>>, vector<1x1x13x20xf32>
    %15 = vector.shape_cast %14 : vector<1x1x13x20xf32> to vector<13x20xf32>
    %c0_10 = arith.constant 0 : index
    %c1 = arith.constant 1 : index
    %c0_11 = arith.constant 0 : index
    %c0_12 = arith.constant 0 : index
    %16 = vector.load %arg4[%c0_10, %c1, %c0_11, %c0_12] : memref<4x5x20x4xf32, #tpu.memory_space<vmem>>, vector<1x1x20x4xf32>
    %17 = vector.shape_cast %16 : vector<1x1x20x4xf32> to vector<20x4xf32>
    %cst_13 = arith.constant dense<0.000000e+00> : vector<13x4xf32>
    %18 = tpu.matmul %15, %17, %cst_13 {dimension_numbers = #tpu.dot_dimension_numbers<[1], [0], [0], [1], [0, 0, 1, 1], [], []>} : vector<13x20xf32>, vector<20x4xf32>, vector<13x4xf32> -> vector<13x4xf32>
    %19 = arith.addf %13, %18 : vector<13x4xf32>
    %c0_14 = arith.constant 0 : index
    %c0_15 = arith.constant 0 : index
    %c4 = arith.constant 4 : index
    %c0_16 = arith.constant 0 : index
    %20 = vector.load %arg1[%c0_14, %c0_15, %c4, %c0_16] : memref<1x4x20x20xf32, #tpu.memory_space<vmem>>, vector<1x1x13x20xf32>
    %21 = vector.shape_cast %20 : vector<1x1x13x20xf32> to vector<13x20xf32>
    %c0_17 = arith.constant 0 : index
    %c2_18 = arith.constant 2 : index
    %c0_19 = arith.constant 0 : index
    %c0_20 = arith.constant 0 : index
    %22 = vector.load %arg4[%c0_17, %c2_18, %c0_19, %c0_20] : memref<4x5x20x4xf32, #tpu.memory_space<vmem>>, vector<1x1x20x4xf32>
    %23 = vector.shape_cast %22 : vector<1x1x20x4xf32> to vector<20x4xf32>
    %cst_21 = arith.constant dense<0.000000e+00> : vector<13x4xf32>
    %24 = tpu.matmul %21, %23, %cst_21 {dimension_numbers = #tpu.dot_dimension_numbers<[1], [0], [0], [1], [0, 0, 1, 1], [], []>} : vector<13x20xf32>, vector<20x4xf32>, vector<13x4xf32> -> vector<13x4xf32>
    %25 = arith.addf %19, %24 : vector<13x4xf32>
    %c0_22 = arith.constant 0 : index
    %c0_23 = arith.constant 0 : index
    %c5 = arith.constant 5 : index
    %c0_24 = arith.constant 0 : index
    %26 = vector.load %arg1[%c0_22, %c0_23, %c5, %c0_24] : memref<1x4x20x20xf32, #tpu.memory_space<vmem>>, vector<1x1x13x20xf32>
    %27 = vector.shape_cast %26 : vector<1x1x13x20xf32> to vector<13x20xf32>
    %c0_25 = arith.constant 0 : index
    %c3_26 = arith.constant 3 : index
    %c0_27 = arith.constant 0 : index
    %c0_28 = arith.constant 0 : index
    %28 = vector.load %arg4[%c0_25, %c3_26, %c0_27, %c0_28] : memref<4x5x20x4xf32, #tpu.memory_space<vmem>>, vector<1x1x20x4xf32>
    %29 = vector.shape_cast %28 : vector<1x1x20x4xf32> to vector<20x4xf32>
    %cst_29 = arith.constant dense<0.000000e+00> : vector<13x4xf32>
    %30 = tpu.matmul %27, %29, %cst_29 {dimension_numbers = #tpu.dot_dimension_numbers<[1], [0], [0], [1], [0, 0, 1, 1], [], []>} : vector<13x20xf32>, vector<20x4xf32>, vector<13x4xf32> -> vector<13x4xf32>
    %31 = arith.addf %25, %30 : vector<13x4xf32>
    %c0_30 = arith.constant 0 : index
    %c0_31 = arith.constant 0 : index
    %c6 = arith.constant 6 : index
    %c0_32 = arith.constant 0 : index
    %32 = vector.load %arg1[%c0_30, %c0_31, %c6, %c0_32] : memref<1x4x20x20xf32, #tpu.memory_space<vmem>>, vector<1x1x13x20xf32>
    %33 = vector.shape_cast %32 : vector<1x1x13x20xf32> to vector<13x20xf32>
    %c0_33 = arith.constant 0 : index
    %c4_34 = arith.constant 4 : index
    %c0_35 = arith.constant 0 : index
    %c0_36 = arith.constant 0 : index
    %34 = vector.load %arg4[%c0_33, %c4_34, %c0_35, %c0_36] : memref<4x5x20x4xf32, #tpu.memory_space<vmem>>, vector<1x1x20x4xf32>
    %35 = vector.shape_cast %34 : vector<1x1x20x4xf32> to vector<20x4xf32>
    %cst_37 = arith.constant dense<0.000000e+00> : vector<13x4xf32>
    %36 = tpu.matmul %33, %35, %cst_37 {dimension_numbers = #tpu.dot_dimension_numbers<[1], [0], [0], [1], [0, 0, 1, 1], [], []>} : vector<13x20xf32>, vector<20x4xf32>, vector<13x4xf32> -> vector<13x4xf32>
    %37 = arith.addf %31, %36 : vector<13x4xf32>
    %cst_38 = arith.constant dense<0.000000e+00> : vector<4x4xf32>
    %38 = tpu.matmul %6, %37, %cst_38 {dimension_numbers = #tpu.dot_dimension_numbers<[1], [0], [0], [1], [0, 0, 1, 1], [], []>} : vector<4x13xf32>, vector<13x4xf32>, vector<4x4xf32> -> vector<4x4xf32>
    %c0_39 = arith.constant 0 : index
    %c0_40 = arith.constant 0 : index
    %c0_41 = arith.constant 0 : index
    %c0_42 = arith.constant 0 : index
    %39 = vector.load %arg3[%c0_39, %c0_40, %c0_41, %c0_42] : memref<1x4x4x4xf32, #tpu.memory_space<vmem>>, vector<1x1x4x4xf32>
    %40 = vector.shape_cast %39 : vector<1x1x4x4xf32> to vector<4x4xf32>
    %c0_43 = arith.constant 0 : index
    %c0_44 = arith.constant 0 : index
    %c0_45 = arith.constant 0 : index
    %c0_46 = arith.constant 0 : index
    %41 = vector.load %arg2[%c0_43, %c0_44, %c0_45, %c0_46] : memref<1x4x4x4xf32, #tpu.memory_space<vmem>>, vector<1x1x4x4xf32>
    %42 = vector.shape_cast %41 : vector<1x1x4x4xf32> to vector<4x4xf32>
    %43 = arith.subf %38, %42 : vector<4x4xf32>
    %44 = arith.mulf %40, %43 : vector<4x4xf32>
    %45 = math.absf %44 : vector<4x4xf32>
    %46 = vector.shape_cast %45 : vector<4x4xf32> to vector<1x4x4xf32>
    %cst_47 = arith.constant dense<0.000000e+00> : vector<1xf32>
    %47 = vector.multi_reduction <add>, %46, %cst_47 [1, 2] : vector<1x4x4xf32> to vector<1xf32>
    %48 = vector.shape_cast %47 : vector<1xf32> to vector<1x1x1xf32>
    %49 = vector.extract %48[0, 0, 0] : f32 from vector<1x1x1xf32>
    %cst_48 = arith.constant 0.000000e+00 : f32
    %50 = arith.addf %cst_48, %49 : f32
    %cst_49 = arith.constant 0.000000e+00 : f32
    %51 = vector.broadcast %cst_49 : f32 to vector<13x4xf32>
    %c0_50 = arith.constant 0 : index
    %c1_51 = arith.constant 1 : index
    %c1_52 = arith.constant 1 : index
    %c0_53 = arith.constant 0 : index
    %52 = vector.load %arg1[%c0_50, %c1_51, %c1_52, %c0_53] : memref<1x4x20x20xf32, #tpu.memory_space<vmem>>, vector<1x1x13x20xf32>
    %53 = vector.shape_cast %52 : vector<1x1x13x20xf32> to vector<13x20xf32>
    %c1_54 = arith.constant 1 : index
    %c0_55 = arith.constant 0 : index
    %c0_56 = arith.constant 0 : index
    %c0_57 = arith.constant 0 : index
    %54 = vector.load %arg4[%c1_54, %c0_55, %c0_56, %c0_57] : memref<4x5x20x4xf32, #tpu.memory_space<vmem>>, vector<1x1x20x4xf32>
    %55 = vector.shape_cast %54 : vector<1x1x20x4xf32> to vector<20x4xf32>
    %cst_58 = arith.constant dense<0.000000e+00> : vector<13x4xf32>
    %56 = tpu.matmul %53, %55, %cst_58 {dimension_numbers = #tpu.dot_dimension_numbers<[1], [0], [0], [1], [0, 0, 1, 1], [], []>} : vector<13x20xf32>, vector<20x4xf32>, vector<13x4xf32> -> vector<13x4xf32>
    %57 = arith.addf %51, %56 : vector<13x4xf32>
    %c0_59 = arith.constant 0 : index
    %c1_60 = arith.constant 1 : index
    %c2_61 = arith.constant 2 : index
    %c0_62 = arith.constant 0 : index
    %58 = vector.load %arg1[%c0_59, %c1_60, %c2_61, %c0_62] : memref<1x4x20x20xf32, #tpu.memory_space<vmem>>, vector<1x1x13x20xf32>
    %59 = vector.shape_cast %58 : vector<1x1x13x20xf32> to vector<13x20xf32>
    %c1_63 = arith.constant 1 : index
    %c1_64 = arith.constant 1 : index
    %c0_65 = arith.constant 0 : index
    %c0_66 = arith.constant 0 : index
    %60 = vector.load %arg4[%c1_63, %c1_64, %c0_65, %c0_66] : memref<4x5x20x4xf32, #tpu.memory_space<vmem>>, vector<1x1x20x4xf32>
    %61 = vector.shape_cast %60 : vector<1x1x20x4xf32> to vector<20x4xf32>
    %cst_67 = arith.constant dense<0.000000e+00> : vector<13x4xf32>
    %62 = tpu.matmul %59, %61, %cst_67 {dimension_numbers = #tpu.dot_dimension_numbers<[1], [0], [0], [1], [0, 0, 1, 1], [], []>} : vector<13x20xf32>, vector<20x4xf32>, vector<13x4xf32> -> vector<13x4xf32>
    %63 = arith.addf %57, %62 : vector<13x4xf32>
    %c0_68 = arith.constant 0 : index
    %c1_69 = arith.constant 1 : index
    %c3_70 = arith.constant 3 : index
    %c0_71 = arith.constant 0 : index
    %64 = vector.load %arg1[%c0_68, %c1_69, %c3_70, %c0_71] : memref<1x4x20x20xf32, #tpu.memory_space<vmem>>, vector<1x1x13x20xf32>
    %65 = vector.shape_cast %64 : vector<1x1x13x20xf32> to vector<13x20xf32>
    %c1_72 = arith.constant 1 : index
    %c2_73 = arith.constant 2 : index
    %c0_74 = arith.constant 0 : index
    %c0_75 = arith.constant 0 : index
    %66 = vector.load %arg4[%c1_72, %c2_73, %c0_74, %c0_75] : memref<4x5x20x4xf32, #tpu.memory_space<vmem>>, vector<1x1x20x4xf32>
    %67 = vector.shape_cast %66 : vector<1x1x20x4xf32> to vector<20x4xf32>
    %cst_76 = arith.constant dense<0.000000e+00> : vector<13x4xf32>
    %68 = tpu.matmul %65, %67, %cst_76 {dimension_numbers = #tpu.dot_dimension_numbers<[1], [0], [0], [1], [0, 0, 1, 1], [], []>} : vector<13x20xf32>, vector<20x4xf32>, vector<13x4xf32> -> vector<13x4xf32>
    %69 = arith.addf %63, %68 : vector<13x4xf32>
    %c0_77 = arith.constant 0 : index
    %c1_78 = arith.constant 1 : index
    %c4_79 = arith.constant 4 : index
    %c0_80 = arith.constant 0 : index
    %70 = vector.load %arg1[%c0_77, %c1_78, %c4_79, %c0_80] : memref<1x4x20x20xf32, #tpu.memory_space<vmem>>, vector<1x1x13x20xf32>
    %71 = vector.shape_cast %70 : vector<1x1x13x20xf32> to vector<13x20xf32>
    %c1_81 = arith.constant 1 : index
    %c3_82 = arith.constant 3 : index
    %c0_83 = arith.constant 0 : index
    %c0_84 = arith.constant 0 : index
    %72 = vector.load %arg4[%c1_81, %c3_82, %c0_83, %c0_84] : memref<4x5x20x4xf32, #tpu.memory_space<vmem>>, vector<1x1x20x4xf32>
    %73 = vector.shape_cast %72 : vector<1x1x20x4xf32> to vector<20x4xf32>
    %cst_85 = arith.constant dense<0.000000e+00> : vector<13x4xf32>
    %74 = tpu.matmul %71, %73, %cst_85 {dimension_numbers = #tpu.dot_dimension_numbers<[1], [0], [0], [1], [0, 0, 1, 1], [], []>} : vector<13x20xf32>, vector<20x4xf32>, vector<13x4xf32> -> vector<13x4xf32>
    %75 = arith.addf %69, %74 : vector<13x4xf32>
    %c0_86 = arith.constant 0 : index
    %c1_87 = arith.constant 1 : index
    %c5_88 = arith.constant 5 : index
    %c0_89 = arith.constant 0 : index
    %76 = vector.load %arg1[%c0_86, %c1_87, %c5_88, %c0_89] : memref<1x4x20x20xf32, #tpu.memory_space<vmem>>, vector<1x1x13x20xf32>
    %77 = vector.shape_cast %76 : vector<1x1x13x20xf32> to vector<13x20xf32>
    %c1_90 = arith.constant 1 : index
    %c4_91 = arith.constant 4 : index
    %c0_92 = arith.constant 0 : index
    %c0_93 = arith.constant 0 : index
    %78 = vector.load %arg4[%c1_90, %c4_91, %c0_92, %c0_93] : memref<4x5x20x4xf32, #tpu.memory_space<vmem>>, vector<1x1x20x4xf32>
    %79 = vector.shape_cast %78 : vector<1x1x20x4xf32> to vector<20x4xf32>
    %cst_94 = arith.constant dense<0.000000e+00> : vector<13x4xf32>
    %80 = tpu.matmul %77, %79, %cst_94 {dimension_numbers = #tpu.dot_dimension_numbers<[1], [0], [0], [1], [0, 0, 1, 1], [], []>} : vector<13x20xf32>, vector<20x4xf32>, vector<13x4xf32> -> vector<13x4xf32>
    %81 = arith.addf %75, %80 : vector<13x4xf32>
    %cst_95 = arith.constant dense<0.000000e+00> : vector<4x4xf32>
    %82 = tpu.matmul %6, %81, %cst_95 {dimension_numbers = #tpu.dot_dimension_numbers<[1], [0], [0], [1], [0, 0, 1, 1], [], []>} : vector<4x13xf32>, vector<13x4xf32>, vector<4x4xf32> -> vector<4x4xf32>
    %c0_96 = arith.constant 0 : index
    %c1_97 = arith.constant 1 : index
    %c0_98 = arith.constant 0 : index
    %c0_99 = arith.constant 0 : index
    %83 = vector.load %arg3[%c0_96, %c1_97, %c0_98, %c0_99] : memref<1x4x4x4xf32, #tpu.memory_space<vmem>>, vector<1x1x4x4xf32>
    %84 = vector.shape_cast %83 : vector<1x1x4x4xf32> to vector<4x4xf32>
    %c0_100 = arith.constant 0 : index
    %c1_101 = arith.constant 1 : index
    %c0_102 = arith.constant 0 : index
    %c0_103 = arith.constant 0 : index
    %85 = vector.load %arg2[%c0_100, %c1_101, %c0_102, %c0_103] : memref<1x4x4x4xf32, #tpu.memory_space<vmem>>, vector<1x1x4x4xf32>
    %86 = vector.shape_cast %85 : vector<1x1x4x4xf32> to vector<4x4xf32>
    %87 = arith.subf %82, %86 : vector<4x4xf32>
    %88 = arith.mulf %84, %87 : vector<4x4xf32>
    %89 = math.absf %88 : vector<4x4xf32>
    %90 = vector.shape_cast %89 : vector<4x4xf32> to vector<1x4x4xf32>
    %cst_104 = arith.constant dense<0.000000e+00> : vector<1xf32>
    %91 = vector.multi_reduction <add>, %90, %cst_104 [1, 2] : vector<1x4x4xf32> to vector<1xf32>
    %92 = vector.shape_cast %91 : vector<1xf32> to vector<1x1x1xf32>
    %93 = vector.extract %92[0, 0, 0] : f32 from vector<1x1x1xf32>
    %94 = arith.addf %50, %93 : f32
    %cst_105 = arith.constant 0.000000e+00 : f32
    %95 = vector.broadcast %cst_105 : f32 to vector<13x4xf32>
    %c0_106 = arith.constant 0 : index
    %c2_107 = arith.constant 2 : index
    %c3_108 = arith.constant 3 : index
    %c0_109 = arith.constant 0 : index
    %96 = vector.load %arg1[%c0_106, %c2_107, %c3_108, %c0_109] : memref<1x4x20x20xf32, #tpu.memory_space<vmem>>, vector<1x1x13x20xf32>
    %97 = vector.shape_cast %96 : vector<1x1x13x20xf32> to vector<13x20xf32>
    %c2_110 = arith.constant 2 : index
    %c0_111 = arith.constant 0 : index
    %c0_112 = arith.constant 0 : index
    %c0_113 = arith.constant 0 : index
    %98 = vector.load %arg4[%c2_110, %c0_111, %c0_112, %c0_113] : memref<4x5x20x4xf32, #tpu.memory_space<vmem>>, vector<1x1x20x4xf32>
    %99 = vector.shape_cast %98 : vector<1x1x20x4xf32> to vector<20x4xf32>
    %cst_114 = arith.constant dense<0.000000e+00> : vector<13x4xf32>
    %100 = tpu.matmul %97, %99, %cst_114 {dimension_numbers = #tpu.dot_dimension_numbers<[1], [0], [0], [1], [0, 0, 1, 1], [], []>} : vector<13x20xf32>, vector<20x4xf32>, vector<13x4xf32> -> vector<13x4xf32>
    %101 = arith.addf %95, %100 : vector<13x4xf32>
    %c0_115 = arith.constant 0 : index
    %c2_116 = arith.constant 2 : index
    %c4_117 = arith.constant 4 : index
    %c0_118 = arith.constant 0 : index
    %102 = vector.load %arg1[%c0_115, %c2_116, %c4_117, %c0_118] : memref<1x4x20x20xf32, #tpu.memory_space<vmem>>, vector<1x1x13x20xf32>
    %103 = vector.shape_cast %102 : vector<1x1x13x20xf32> to vector<13x20xf32>
    %c2_119 = arith.constant 2 : index
    %c1_120 = arith.constant 1 : index
    %c0_121 = arith.constant 0 : index
    %c0_122 = arith.constant 0 : index
    %104 = vector.load %arg4[%c2_119, %c1_120, %c0_121, %c0_122] : memref<4x5x20x4xf32, #tpu.memory_space<vmem>>, vector<1x1x20x4xf32>
    %105 = vector.shape_cast %104 : vector<1x1x20x4xf32> to vector<20x4xf32>
    %cst_123 = arith.constant dense<0.000000e+00> : vector<13x4xf32>
    %106 = tpu.matmul %103, %105, %cst_123 {dimension_numbers = #tpu.dot_dimension_numbers<[1], [0], [0], [1], [0, 0, 1, 1], [], []>} : vector<13x20xf32>, vector<20x4xf32>, vector<13x4xf32> -> vector<13x4xf32>
    %107 = arith.addf %101, %106 : vector<13x4xf32>
    %c0_124 = arith.constant 0 : index
    %c2_125 = arith.constant 2 : index
    %c5_126 = arith.constant 5 : index
    %c0_127 = arith.constant 0 : index
    %108 = vector.load %arg1[%c0_124, %c2_125, %c5_126, %c0_127] : memref<1x4x20x20xf32, #tpu.memory_space<vmem>>, vector<1x1x13x20xf32>
    %109 = vector.shape_cast %108 : vector<1x1x13x20xf32> to vector<13x20xf32>
    %c2_128 = arith.constant 2 : index
    %c2_129 = arith.constant 2 : index
    %c0_130 = arith.constant 0 : index
    %c0_131 = arith.constant 0 : index
    %110 = vector.load %arg4[%c2_128, %c2_129, %c0_130, %c0_131] : memref<4x5x20x4xf32, #tpu.memory_space<vmem>>, vector<1x1x20x4xf32>
    %111 = vector.shape_cast %110 : vector<1x1x20x4xf32> to vector<20x4xf32>
    %cst_132 = arith.constant dense<0.000000e+00> : vector<13x4xf32>
    %112 = tpu.matmul %109, %111, %cst_132 {dimension_numbers = #tpu.dot_dimension_numbers<[1], [0], [0], [1], [0, 0, 1, 1], [], []>} : vector<13x20xf32>, vector<20x4xf32>, vector<13x4xf32> -> vector<13x4xf32>
    %113 = arith.addf %107, %112 : vector<13x4xf32>
    %c0_133 = arith.constant 0 : index
    %c2_134 = arith.constant 2 : index
    %c6_135 = arith.constant 6 : index
    %c0_136 = arith.constant 0 : index
    %114 = vector.load %arg1[%c0_133, %c2_134, %c6_135, %c0_136] : memref<1x4x20x20xf32, #tpu.memory_space<vmem>>, vector<1x1x13x20xf32>
    %115 = vector.shape_cast %114 : vector<1x1x13x20xf32> to vector<13x20xf32>
    %c2_137 = arith.constant 2 : index
    %c3_138 = arith.constant 3 : index
    %c0_139 = arith.constant 0 : index
    %c0_140 = arith.constant 0 : index
    %116 = vector.load %arg4[%c2_137, %c3_138, %c0_139, %c0_140] : memref<4x5x20x4xf32, #tpu.memory_space<vmem>>, vector<1x1x20x4xf32>
    %117 = vector.shape_cast %116 : vector<1x1x20x4xf32> to vector<20x4xf32>
    %cst_141 = arith.constant dense<0.000000e+00> : vector<13x4xf32>
    %118 = tpu.matmul %115, %117, %cst_141 {dimension_numbers = #tpu.dot_dimension_numbers<[1], [0], [0], [1], [0, 0, 1, 1], [], []>} : vector<13x20xf32>, vector<20x4xf32>, vector<13x4xf32> -> vector<13x4xf32>
    %119 = arith.addf %113, %118 : vector<13x4xf32>
    %c0_142 = arith.constant 0 : index
    %c2_143 = arith.constant 2 : index
    %c7 = arith.constant 7 : index
    %c0_144 = arith.constant 0 : index
    %120 = vector.load %arg1[%c0_142, %c2_143, %c7, %c0_144] : memref<1x4x20x20xf32, #tpu.memory_space<vmem>>, vector<1x1x13x20xf32>
    %121 = vector.shape_cast %120 : vector<1x1x13x20xf32> to vector<13x20xf32>
    %c2_145 = arith.constant 2 : index
    %c4_146 = arith.constant 4 : index
    %c0_147 = arith.constant 0 : index
    %c0_148 = arith.constant 0 : index
    %122 = vector.load %arg4[%c2_145, %c4_146, %c0_147, %c0_148] : memref<4x5x20x4xf32, #tpu.memory_space<vmem>>, vector<1x1x20x4xf32>
    %123 = vector.shape_cast %122 : vector<1x1x20x4xf32> to vector<20x4xf32>
    %cst_149 = arith.constant dense<0.000000e+00> : vector<13x4xf32>
    %124 = tpu.matmul %121, %123, %cst_149 {dimension_numbers = #tpu.dot_dimension_numbers<[1], [0], [0], [1], [0, 0, 1, 1], [], []>} : vector<13x20xf32>, vector<20x4xf32>, vector<13x4xf32> -> vector<13x4xf32>
    %125 = arith.addf %119, %124 : vector<13x4xf32>
    %cst_150 = arith.constant dense<0.000000e+00> : vector<4x4xf32>
    %126 = tpu.matmul %6, %125, %cst_150 {dimension_numbers = #tpu.dot_dimension_numbers<[1], [0], [0], [1], [0, 0, 1, 1], [], []>} : vector<4x13xf32>, vector<13x4xf32>, vector<4x4xf32> -> vector<4x4xf32>
    %c0_151 = arith.constant 0 : index
    %c2_152 = arith.constant 2 : index
    %c0_153 = arith.constant 0 : index
    %c0_154 = arith.constant 0 : index
    %127 = vector.load %arg3[%c0_151, %c2_152, %c0_153, %c0_154] : memref<1x4x4x4xf32, #tpu.memory_space<vmem>>, vector<1x1x4x4xf32>
    %128 = vector.shape_cast %127 : vector<1x1x4x4xf32> to vector<4x4xf32>
    %c0_155 = arith.constant 0 : index
    %c2_156 = arith.constant 2 : index
    %c0_157 = arith.constant 0 : index
    %c0_158 = arith.constant 0 : index
    %129 = vector.load %arg2[%c0_155, %c2_156, %c0_157, %c0_158] : memref<1x4x4x4xf32, #tpu.memory_space<vmem>>, vector<1x1x4x4xf32>
    %130 = vector.shape_cast %129 : vector<1x1x4x4xf32> to vector<4x4xf32>
    %131 = arith.subf %126, %130 : vector<4x4xf32>
    %132 = arith.mulf %128, %131 : vector<4x4xf32>
    %133 = math.absf %132 : vector<4x4xf32>
    %134 = vector.shape_cast %133 : vector<4x4xf32> to vector<1x4x4xf32>
    %cst_159 = arith.constant dense<0.000000e+00> : vector<1xf32>
    %135 = vector.multi_reduction <add>, %134, %cst_159 [1, 2] : vector<1x4x4xf32> to vector<1xf32>
    %136 = vector.shape_cast %135 : vector<1xf32> to vector<1x1x1xf32>
    %137 = vector.extract %136[0, 0, 0] : f32 from vector<1x1x1xf32>
    %138 = arith.addf %94, %137 : f32
    %cst_160 = arith.constant 0.000000e+00 : f32
    %139 = vector.broadcast %cst_160 : f32 to vector<13x4xf32>
    %c0_161 = arith.constant 0 : index
    %c3_162 = arith.constant 3 : index
    %c0_163 = arith.constant 0 : index
    %c0_164 = arith.constant 0 : index
    %140 = vector.load %arg1[%c0_161, %c3_162, %c0_163, %c0_164] : memref<1x4x20x20xf32, #tpu.memory_space<vmem>>, vector<1x1x13x20xf32>
    %141 = vector.shape_cast %140 : vector<1x1x13x20xf32> to vector<13x20xf32>
    %c3_165 = arith.constant 3 : index
    %c0_166 = arith.constant 0 : index
    %c0_167 = arith.constant 0 : index
    %c0_168 = arith.constant 0 : index
    %142 = vector.load %arg4[%c3_165, %c0_166, %c0_167, %c0_168] : memref<4x5x20x4xf32, #tpu.memory_space<vmem>>, vector<1x1x20x4xf32>
    %143 = vector.shape_cast %142 : vector<1x1x20x4xf32> to vector<20x4xf32>
    %cst_169 = arith.constant dense<0.000000e+00> : vector<13x4xf32>
    %144 = tpu.matmul %141, %143, %cst_169 {dimension_numbers = #tpu.dot_dimension_numbers<[1], [0], [0], [1], [0, 0, 1, 1], [], []>} : vector<13x20xf32>, vector<20x4xf32>, vector<13x4xf32> -> vector<13x4xf32>
    %145 = arith.addf %139, %144 : vector<13x4xf32>
    %c0_170 = arith.constant 0 : index
    %c3_171 = arith.constant 3 : index
    %c1_172 = arith.constant 1 : index
    %c0_173 = arith.constant 0 : index
    %146 = vector.load %arg1[%c0_170, %c3_171, %c1_172, %c0_173] : memref<1x4x20x20xf32, #tpu.memory_space<vmem>>, vector<1x1x13x20xf32>
    %147 = vector.shape_cast %146 : vector<1x1x13x20xf32> to vector<13x20xf32>
    %c3_174 = arith.constant 3 : index
    %c1_175 = arith.constant 1 : index
    %c0_176 = arith.constant 0 : index
    %c0_177 = arith.constant 0 : index
    %148 = vector.load %arg4[%c3_174, %c1_175, %c0_176, %c0_177] : memref<4x5x20x4xf32, #tpu.memory_space<vmem>>, vector<1x1x20x4xf32>
    %149 = vector.shape_cast %148 : vector<1x1x20x4xf32> to vector<20x4xf32>
    %cst_178 = arith.constant dense<0.000000e+00> : vector<13x4xf32>
    %150 = tpu.matmul %147, %149, %cst_178 {dimension_numbers = #tpu.dot_dimension_numbers<[1], [0], [0], [1], [0, 0, 1, 1], [], []>} : vector<13x20xf32>, vector<20x4xf32>, vector<13x4xf32> -> vector<13x4xf32>
    %151 = arith.addf %145, %150 : vector<13x4xf32>
    %c0_179 = arith.constant 0 : index
    %c3_180 = arith.constant 3 : index
    %c2_181 = arith.constant 2 : index
    %c0_182 = arith.constant 0 : index
    %152 = vector.load %arg1[%c0_179, %c3_180, %c2_181, %c0_182] : memref<1x4x20x20xf32, #tpu.memory_space<vmem>>, vector<1x1x13x20xf32>
    %153 = vector.shape_cast %152 : vector<1x1x13x20xf32> to vector<13x20xf32>
    %c3_183 = arith.constant 3 : index
    %c2_184 = arith.constant 2 : index
    %c0_185 = arith.constant 0 : index
    %c0_186 = arith.constant 0 : index
    %154 = vector.load %arg4[%c3_183, %c2_184, %c0_185, %c0_186] : memref<4x5x20x4xf32, #tpu.memory_space<vmem>>, vector<1x1x20x4xf32>
    %155 = vector.shape_cast %154 : vector<1x1x20x4xf32> to vector<20x4xf32>
    %cst_187 = arith.constant dense<0.000000e+00> : vector<13x4xf32>
    %156 = tpu.matmul %153, %155, %cst_187 {dimension_numbers = #tpu.dot_dimension_numbers<[1], [0], [0], [1], [0, 0, 1, 1], [], []>} : vector<13x20xf32>, vector<20x4xf32>, vector<13x4xf32> -> vector<13x4xf32>
    %157 = arith.addf %151, %156 : vector<13x4xf32>
    %c0_188 = arith.constant 0 : index
    %c3_189 = arith.constant 3 : index
    %c3_190 = arith.constant 3 : index
    %c0_191 = arith.constant 0 : index
    %158 = vector.load %arg1[%c0_188, %c3_189, %c3_190, %c0_191] : memref<1x4x20x20xf32, #tpu.memory_space<vmem>>, vector<1x1x13x20xf32>
    %159 = vector.shape_cast %158 : vector<1x1x13x20xf32> to vector<13x20xf32>
    %c3_192 = arith.constant 3 : index
    %c3_193 = arith.constant 3 : index
    %c0_194 = arith.constant 0 : index
    %c0_195 = arith.constant 0 : index
    %160 = vector.load %arg4[%c3_192, %c3_193, %c0_194, %c0_195] : memref<4x5x20x4xf32, #tpu.memory_space<vmem>>, vector<1x1x20x4xf32>
    %161 = vector.shape_cast %160 : vector<1x1x20x4xf32> to vector<20x4xf32>
    %cst_196 = arith.constant dense<0.000000e+00> : vector<13x4xf32>
    %162 = tpu.matmul %159, %161, %cst_196 {dimension_numbers = #tpu.dot_dimension_numbers<[1], [0], [0], [1], [0, 0, 1, 1], [], []>} : vector<13x20xf32>, vector<20x4xf32>, vector<13x4xf32> -> vector<13x4xf32>
    %163 = arith.addf %157, %162 : vector<13x4xf32>
    %c0_197 = arith.constant 0 : index
    %c3_198 = arith.constant 3 : index
    %c4_199 = arith.constant 4 : index
    %c0_200 = arith.constant 0 : index
    %164 = vector.load %arg1[%c0_197, %c3_198, %c4_199, %c0_200] : memref<1x4x20x20xf32, #tpu.memory_space<vmem>>, vector<1x1x13x20xf32>
    %165 = vector.shape_cast %164 : vector<1x1x13x20xf32> to vector<13x20xf32>
    %c3_201 = arith.constant 3 : index
    %c4_202 = arith.constant 4 : index
    %c0_203 = arith.constant 0 : index
    %c0_204 = arith.constant 0 : index
    %166 = vector.load %arg4[%c3_201, %c4_202, %c0_203, %c0_204] : memref<4x5x20x4xf32, #tpu.memory_space<vmem>>, vector<1x1x20x4xf32>
    %167 = vector.shape_cast %166 : vector<1x1x20x4xf32> to vector<20x4xf32>
    %cst_205 = arith.constant dense<0.000000e+00> : vector<13x4xf32>
    %168 = tpu.matmul %165, %167, %cst_205 {dimension_numbers = #tpu.dot_dimension_numbers<[1], [0], [0], [1], [0, 0, 1, 1], [], []>} : vector<13x20xf32>, vector<20x4xf32>, vector<13x4xf32> -> vector<13x4xf32>
    %169 = arith.addf %163, %168 : vector<13x4xf32>
    %cst_206 = arith.constant dense<0.000000e+00> : vector<4x4xf32>
    %170 = tpu.matmul %6, %169, %cst_206 {dimension_numbers = #tpu.dot_dimension_numbers<[1], [0], [0], [1], [0, 0, 1, 1], [], []>} : vector<4x13xf32>, vector<13x4xf32>, vector<4x4xf32> -> vector<4x4xf32>
    %c0_207 = arith.constant 0 : index
    %c3_208 = arith.constant 3 : index
    %c0_209 = arith.constant 0 : index
    %c0_210 = arith.constant 0 : index
    %171 = vector.load %arg3[%c0_207, %c3_208, %c0_209, %c0_210] : memref<1x4x4x4xf32, #tpu.memory_space<vmem>>, vector<1x1x4x4xf32>
    %172 = vector.shape_cast %171 : vector<1x1x4x4xf32> to vector<4x4xf32>
    %c0_211 = arith.constant 0 : index
    %c3_212 = arith.constant 3 : index
    %c0_213 = arith.constant 0 : index
    %c0_214 = arith.constant 0 : index
    %173 = vector.load %arg2[%c0_211, %c3_212, %c0_213, %c0_214] : memref<1x4x4x4xf32, #tpu.memory_space<vmem>>, vector<1x1x4x4xf32>
    %174 = vector.shape_cast %173 : vector<1x1x4x4xf32> to vector<4x4xf32>
    %175 = arith.subf %170, %174 : vector<4x4xf32>
    %176 = arith.mulf %172, %175 : vector<4x4xf32>
    %177 = math.absf %176 : vector<4x4xf32>
    %178 = vector.shape_cast %177 : vector<4x4xf32> to vector<1x4x4xf32>
    %cst_215 = arith.constant dense<0.000000e+00> : vector<1xf32>
    %179 = vector.multi_reduction <add>, %178, %cst_215 [1, 2] : vector<1x4x4xf32> to vector<1xf32>
    %180 = vector.shape_cast %179 : vector<1xf32> to vector<1x1x1xf32>
    %181 = vector.extract %180[0, 0, 0] : f32 from vector<1x1x1xf32>
    %182 = arith.addf %138, %181 : f32
    %183 = vector.broadcast %182 : f32 to vector<1x1x128xf32>
    %c0_216 = arith.constant 0 : index
    %c0_217 = arith.constant 0 : index
    %c0_218 = arith.constant 0 : index
    %184 = vector.load %arg5[%c0_216, %c0_217, %c0_218] : memref<1x1x128xf32, #tpu.memory_space<vmem>>, vector<1x1x128xf32>
    tpu.vector_store %arg5[%c0_216, %c0_217, %c0_218], %183 {strides = array<i32>} : memref<1x1x128xf32, #tpu.memory_space<vmem>>, vector<1x1x128xf32>,
    return
  }
  func.func @transform_0(%arg0: i32) -> (i32, i32, i32, i32) {
    %c0_i32 = arith.constant 0 : i32
    %c0_i32_0 = arith.constant 0 : i32
    %c0_i32_1 = arith.constant 0 : i32
    %c0_i32_2 = arith.constant 0 : i32
    return %arg0, %c0_i32, %c0_i32_0, %c0_i32_1 : i32, i32, i32, i32
  }
  func.func @transform_1(%arg0: i32) -> (i32, i32, i32, i32) {
    %c0_i32 = arith.constant 0 : i32
    %c0_i32_0 = arith.constant 0 : i32
    %c0_i32_1 = arith.constant 0 : i32
    %c0_i32_2 = arith.constant 0 : i32
    return %arg0, %c0_i32, %c0_i32_0, %c0_i32_1 : i32, i32, i32, i32
  }
  func.func @transform_2(%arg0: i32) -> (i32, i32, i32, i32) {
    %c0_i32 = arith.constant 0 : i32
    %c0_i32_0 = arith.constant 0 : i32
    %c0_i32_1 = arith.constant 0 : i32
    %c0_i32_2 = arith.constant 0 : i32
    %c0_i32_3 = arith.constant 0 : i32
    return %c0_i32, %c0_i32_0, %c0_i32_1, %c0_i32_2 : i32, i32, i32, i32
  }
  func.func @transform_3(%arg0: i32) -> (i32, i32, i32, i32) {
    %c0_i32 = arith.constant 0 : i32
    %c0_i32_0 = arith.constant 0 : i32
    %c0_i32_1 = arith.constant 0 : i32
    %c0_i32_2 = arith.constant 0 : i32
    %c0_i32_3 = arith.constant 0 : i32
    return %c0_i32, %c0_i32_0, %c0_i32_1, %c0_i32_2 : i32, i32, i32, i32
  }
  func.func @transform_4(%arg0: i32) -> (i32, i32, i32) {
    %c0_i32 = arith.constant 0 : i32
    %c0_i32_0 = arith.constant 0 : i32
    %c0_i32_1 = arith.constant 0 : i32
    return %arg0, %c0_i32, %c0_i32_0 : i32, i32, i32
  }
}

</mosaic_0001>

<bundles_post_ra>
// kernel: tpu_custom_call.1
= control target key start
LH: loop header
LB: loop body
LE: loop exit
PB: predicated region body
PF: predicated region fallthrough
CT: control target
= control target key end

     0   :  { %vm12_vm0 = vcmask 158720   ;;  %s81_s0 = inlined_call_operand.vmem [shape: f32[1,2,20,20], index: 0, kind: input, shape index: {}]   ;;  %s82_s1 = inlined_call_operand.hbm [shape: f32[4,20], index: 1, kind: output, shape index: {}]  }
   0x1   :  { %v29_v0 = vld [vmem:[%s81_s0 + $0x1b] ss:$4 sm:$0xf] }
   0x2   :  { %6 = vsyncpa [#allocation3], 0  ;;  %13 = vst.msk [vmem:[#allocation2] sm:$0xf] %vm12_vm0, %v29_v0  ;;  %s55_s8 = smov [#allocation2]  }
   0x3   :  { %s20_s9 = sshll.u32 %s55_s8, 4  ;;  %s21_s9 = int_to_ptr.vmem [resolvable:$true] %s20_s9 }
   0x4   :  { %s31_s10 = scalar_lea.vmem %s21_s9, 64  ;;  %p36_p1 = scmp.lt.s32.totalorder %s21_s9, %s21_s9 }
   0x5   :  { %p32_p0 = scmp.ne.s32.totalorder %s21_s9, %s31_s10  ;;  %p37_p2 = scmp.lt.s32.totalorder %s31_s10, %s31_s10 }
   0x7   :  { %p38_p3 = por %p37_p2, %p36_p1 }
   0x9   :  { %p39_p4 = pnand %p38_p3, %p32_p0 }
   0xb   :  { %42 = shalt.err (!%p39_p4)
}
   0xc   :  { %s43_s13 = scalar_lea.hbm %s82_s1, 64 }
   0xd   :  { %p44_p5 = scmp.ne.s32.totalorder %s82_s1, %s43_s13  ;;  %p47_p6 = scmp.lt.u32.totalorder %s43_s13, %s82_s1 }
   0xf   :  { %p49_p7 = pnand %p47_p6, %p44_p5 }
  0x11   :  { %52 = shalt.err (!%p49_p7)
}
  0x12   :  { %23 = dma.vmem_to_hbm [thread:$0]  %s21_s9, 64, %s82_s1, [#allocation3]  }
  0x13   :  { %53 = dma.done.wait [#allocation3], 64  }
  0x14   :  { %54 = vsyncadd [#allocation3], 4294967232 }
  0x15   :  { %27 = vsyncpa [#allocation3], 1 }

// kernel: tpu_custom_call.1
= control target key start
LH: loop header
LB: loop body
LE: loop exit
PB: predicated region body
PF: predicated region fallthrough
CT: control target
= control target key end

     0   :  { %9 = vsyncpa [#allocation3], 0  ;;  %s3734_s0 = inlined_call_operand.vmem [shape: f32[2,4,20,20], index: 0, kind: input, shape index: {}]   ;;  %s3735_s1 = inlined_call_operand.vmem [shape: f32[2,4,4,4], index: 1, kind: input, shape index: {}]   ;;  %s3736_s2 = inlined_call_operand.vmem [shape: f32[1,4,4,4], index: 2, kind: input, shape index: {}]   ;;  %s3737_s3 = inlined_call_operand.vmem [shape: f32[4,5,20,4], index: 3, kind: input, shape index: {}]   ;;  %s3738_s4 = inlined_call_operand.hbm [shape: f32[2,1,128], index: 4, kind: output, shape index: {}]  }
   0x1   :  { %11 = vsyncpa [#allocation3 + $0x1], 0  ;;  %s3268_s15 = smov 0   ;;  %s3270_s16 = smov 0  }
   0x2   :  { %s3272_s17 = smov 0   ;;  %s3274_s18 = smov 0  }
   0x3 LB: > { %s3289_s19 = sadd.s32 4294967295, %s3236_s18   ;;  %s2501_s20 = sadd.s32 4294967294, %s3236_s18   ;;  %s3236_s18 = sphi %s3274_s18, %s3746_s18   ;;  %s3232_s17 = sphi %s3272_s17, %s3745_s17   ;;  %s3228_s16 = sphi %s3270_s16, %s3744_s16   ;;  %s3224_s15 = sphi %s3268_s15, %s3743_s15  }
   0x4   : > { %s3293_s21 = sadd.s32 1, %s3236_s18   ;;  %s118_s22 = sadd.s32 1, %s3232_s17 }
   0x5   : > { %s115_s23 = ssub.s32 %s3236_s18, %s3293_s21  ;;  %p128_p0 = scmp.ne.s32.totalorder %s3232_s17, %s3228_s16 }
   0x6   : > { %p116_p1 = scmp.eq.s32.totalorder %s115_s23, 0  ;;  %p129_p2 = scmp.eq.s32.totalorder %s3289_s19, 1 }
   0x7   : > { %p134_p3 = scmp.ne.s32.totalorder %s3228_s16, %s3224_s15  ;;  %p135_p4 = scmp.eq.s32.totalorder %s2501_s20, 1 }
   0x8   : > { %s3304_s24 = scalar_select %p116_p1, %s3232_s17, %s118_s22  }
   0x9   : > { %p3306_p5 = por %p129_p2, %p128_p0  ;;  %p3310_p6 = por %p135_p4, %p134_p3 }
   0xa   : > { %p2504_p7 = scmp.ge.s32.totalorder %s3236_s18, 1  ;;  %p175_p8 = scmp.lt.s32.totalorder %s3236_s18, 3 }
   0xc   : > { %p176_p9 = pnand %p2504_p7, %p175_p8 }
   0xd   : > { %v2509_v0 = vld [vmem:[%s3737_s3 + $0x18] sm:$0xff] (!%p176_p9)  ;;  %v2510_v1 = vld [vmem:[%s3737_s3 + $0x20] sm:$0xff] (!%p176_p9)  ;;  %p205_p10 = scmp.lt.s32.totalorder (!%p176_p9), %s3289_s19, 1  ;;  %v2511_v3 = vld [vmem:[%s3737_s3 + $0x28] sm:$0xf] (!%p176_p9)  ;;  %vm241_vm0 = vcmask (!%p176_p9), 1043456   ;;  %v215_v32 = vlaneseq (!%p176_p9) }
   0xe   : > { %179 = sbr.rel (%p176_p9) target bundleno = 1486 (0x5ce), region = 36  ;;  %v2994_v2 = vpack.c.bf16 (!%p176_p9), %v2510_v1, %v2509_v0  ;;  %v225_v4 = vld [vmem:[%s3737_s3] sm:$0xff] (!%p176_p9)  ;;  %v226_v5 = vld [vmem:[%s3737_s3 + $0x8] sm:$0xff] (!%p176_p9)  ;;  %vm234_vm1 = vcmask (!%p176_p9), 162816   ;;  %v227_v10 = vld [vmem:[%s3737_s3 + $0x10] sm:$0xf] (!%p176_p9) }
   0xf   : > { %v2998_v6 = vpack.c.bf16 (!%p176_p9), %v226_v5, %v225_v4  ;;  %v2518_v11 = vld [vmem:[%s3737_s3 + $0x30] sm:$0xff] (!%p176_p9)  ;;  %v2519_v12 = vld [vmem:[%s3737_s3 + $0x38] sm:$0xff] (!%p176_p9)  ;;  %v2520_v16 = vld [vmem:[%s3737_s3 + $0x40] sm:$0xf] (!%p176_p9)  ;;  %v3238_v30 = vmov (!%p176_p9), 0.0|0.0   ;;  %vm3239_vm2 = vmmov (!%p176_p9), 0  }
  0x10   : > { %2995 = vmatprep.subr.bf16.mxu0 (!%p176_p9), %v2994_v2  ;;  %v3002_v13 = vpack.c.bf16 (!%p176_p9), %v2519_v12, %v2518_v11  ;;  %v2524_v17 = vld [vmem:[%s3737_s3 + $0x48] sm:$0xff] (!%p176_p9)  ;;  %v2525_v18 = vld [vmem:[%s3737_s3 + $0x50] sm:$0xff] (!%p176_p9)  ;;  %v2526_v22 = vld [vmem:[%s3737_s3 + $0x58] sm:$0xf] (!%p176_p9)  ;;  %3014 = vmatprep.subr.bf16.mxu1 (!%p176_p9), %v3238_v30  ;;  %v3240_v31 = vmov (!%p176_p9), 0.0   ;;  %v216_v33 = vshrl.u32 (!%p176_p9), %v215_v32, 7 }
  0x11   : > { %2997 = vmatpush3.bf16.msra.mxu0 (!%p176_p9), %v2994_v2  ;;  %v3006_v19 = vpack.c.bf16 (!%p176_p9), %v2525_v18, %v2524_v17  ;;  %v2530_v23 = vld [vmem:[%s3737_s3 + $0x60] sm:$0xff] (!%p176_p9)  ;;  %v2531_v24 = vld [vmem:[%s3737_s3 + $0x68] sm:$0xff] (!%p176_p9)  ;;  %v2532_v28 = vld [vmem:[%s3737_s3 + $0x70] sm:$0xf] (!%p176_p9)  ;;  %2835 = vmatprep.mubr.msk.f32.mxu1 (!%p176_p9), %vm3239_vm2, %v3240_v31  ;;  %v218_v34 = vand.u32 (!%p176_p9), 127, %v215_v32  ;;  %vm684_vm3 = vcmask (!%p176_p9), 1044480  }
  0x12   : > { %2790 = vmatprep.subr.msk.mxu0 (!%p176_p9), %vm241_vm0, %v2511_v3  ;;  %v3010_v25 = vpack.c.bf16 (!%p176_p9), %v2531_v24, %v2530_v23  ;;  %v219_v35 = vmul.u32 (!%p176_p9), 4, %v216_v33  ;;  %v2545_v36 = vld [vmem:[%s3737_s3 + $0x90] sm:$0xff] (!%p176_p9)  ;;  %v2546_v37 = vld [vmem:[%s3737_s3 + $0x98] sm:$0xff] (!%p176_p9)  ;;  %vm3241_vm4 = vmmov (!%p176_p9), 1   ;;  %vm680_vm7 = vcmask (!%p176_p9), 105472   ;;  %v2541_v47 = vld [vmem:[%s3737_s3 + $0x80] sm:$0xff] (!%p176_p9) }
  0x13   : > { %vm3413_vm5 = vmpackc.low (!%p176_p9), %vm684_vm3, %vm3241_vm4  ;;  %v3018_v41 = vpack.c.bf16 (!%p176_p9), %v2546_v37, %v2545_v36  ;;  %v2547_v45 = vld [vmem:[%s3737_s3 + $0xa0] sm:$0xf] (!%p176_p9)  ;;  %v2540_v46 = vld [vmem:[%s3737_s3 + $0x78] sm:$0xff] (!%p176_p9)  ;;  %vm763_vm8 = vcmask (!%p176_p9), 27648   ;;  %s203_s23 = sand.u32 (!%p176_p9), 1, %s3228_s16  }
  0x14   : > { %vm220_vm6 = vcmp.eq.s32.totalorder (!%p176_p9), %v218_v34, %v219_v35  ;;  %v3022_v48 = vpack.c.bf16 (!%p176_p9), %v2541_v47, %v2540_v46  ;;  %v2542_v51 = vld [vmem:[%s3737_s3 + $0x88] sm:$0xf] (!%p176_p9)  ;;  %v2557_v53 = vld [vmem:[%s3737_s3 + $0xb0] sm:$0xff] (!%p176_p9)  ;;  %v2558_v57 = vld [vmem:[%s3737_s3 + $0xb8] sm:$0xf] (!%p176_p9)  ;;  %s204_s5 = scalar_lea.vmem (!%p176_p9), [#allocation2], %s203_s23 }
  0x15   : > { %s3327_s7 = scalar_select %p205_p10, %s3289_s19, 1  ;;  %2791 = vmatpush3.msk.msra.mxu0 %vm241_vm0, %v2511_v3  ;;  %v3420_v43 = vsel %vm220_vm6, 1.0, %v3240_v31  ;;  %v2556_v52 = vld [vmem:[%s3737_s3 + $0xa8] sm:$0xff]  ;;  %v2564_v58 = vld [vmem:[%s3737_s3 + $0xc0] sm:$0xff]  ;;  %v2566_v63 = vld [vmem:[%s3737_s3 + $0xd0] sm:$0xf] }
  0x16   : > { %2999 = vmatprep.subr.bf16.mxu0 %v2998_v6  ;;  %v3026_v54 = vpack.c.bf16 %v2557_v53, %v2556_v52  ;;  %v2565_v59 = vld [vmem:[%s3737_s3 + $0xc8] sm:$0xff]  ;;  %v2572_v0 = vld [vmem:[%s3737_s3 + $0xd8] sm:$0xff]  ;;  %v2573_v1 = vld [vmem:[%s3737_s3 + $0xe0] sm:$0xff]  ;;  %s2434_s6 = sshll.u32 %s204_s5, 4  ;;  %s2422_s13 = scalar_lea.sflag [#allocation3], %s203_s23  ;;  %s3694_s6 = int_to_ptr.vmem [resolvable:$true] %s2434_s6 }
  0x17   : > { %s3122_s12 = smul.u32 96, %s3327_s7  ;;  %v3030_v60 = vpack.c.bf16 %v2565_v59, %v2564_v58  ;;  %v3034_v2 = vpack.c.bf16 %v2573_v1, %v2572_v0  ;;  %v2574_v5 = vld [vmem:[%s3737_s3 + $0xe8] sm:$0xf]  ;;  %s2673_s30 = sshll.u32 %s3327_s7, 4  ;;  %v2584_v23 = vld [vmem:[%s3737_s3 + $0xf0] sm:$0xff]  ;;  %v2585_v24 = vld [vmem:[%s3737_s3 + $0xf8] sm:$0xff] }
  0x18   : > { %s3500_s8 = scalar_lea.vmem %s3735_s1, %s2673_s30  ;;  %v2601_v32 = vld [vmem:[%s3737_s3 + $0x128] sm:$0xff]  ;;  %v2602_v36 = vld [vmem:[%s3737_s3 + $0x130] sm:$0xf]  ;;  %v2608_v37 = vld [vmem:[%s3737_s3 + $0x138] sm:$0xff]  ;;  %s2670_s30 = sshll.u32 %s3289_s19, 4 }
  0x19   : > { %s3340_s20 = scalar_lea.vmem %s3734_s0, %s3122_s12  ;;  %v2617_v46 = vld [vmem:[%s3737_s3 + $0x158] sm:$0xff]  ;;  %v2581_v59 = vld [vmem:[%s3500_s8 + $0x4] sm:$0xf]  ;;  %s3692_s12 = scalar_lea.hbm %s3738_s4, %s2670_s30 }
  0x1a   : > { %v228_v7 = vld [vmem:[%s3340_s20 + $0x3] sm:$0xff]  ;;  %v229_v8 = vld [vmem:[%s3340_s20 + $0xb] sm:$0x1f]  ;;  %v2543_v44 = vld [vmem:[%s3340_s20 + $0x1a] sm:$0xff]  ;;  %s3242_s19 = smov [#allocation2]  }
  0x1b   : > { %v223_v9 = vld [vmem:[%s3340_s20 + $0x2] sm:$0xff]  ;;  %2792 = vmatprep.mubr.msk.f32.mxu0 %vm234_vm1, %v228_v7  ;;  %v224_v14 = vld [vmem:[%s3340_s20 + $0xa] sm:$0x1f]  ;;  %v2538_v50 = vld [vmem:[%s3340_s20 + $0x19] sm:$0xff]  ;;  %s3178_s14 = sshll.u32 %s3242_s19, 4  ;;  %s3179_s14 = int_to_ptr.vmem [resolvable:$false] %s3178_s14 }
  0x1c   : > { %2793 = vmatmul.mubr.msk.f32.vlgmr.msra.gmra.mrb[0].mxu0 %vm234_vm1, %v229_v8  ;;  %v404_v15 = vld [vmem:[%s3340_s20 + $0x4] sm:$0xff]  ;;  %v405_v20 = vld [vmem:[%s3340_s20 + $0xc] sm:$0x1f]  ;;  %v2554_v56 = vld [vmem:[%s3340_s20 + $0x1b] sm:$0xff]  ;;  %p3181_p0 = scmp.lt.s32.totalorder %s3694_s6, %s3179_s14 }
  0x1d   : > { %3001 = vmatpush3.bf16.msra.mxu0 %v2998_v6  ;;  %2801 = vmatprep.mubr.msk.f32.mxu0 %vm234_vm1, %v223_v9  ;;  %v496_v21 = vld [vmem:[%s3340_s20 + $0x5] sm:$0xff]  ;;  %v497_v26 = vld [vmem:[%s3340_s20 + $0xd] sm:$0x1f]  ;;  %v2562_v62 = vld [vmem:[%s3340_s20 + $0x1c] sm:$0xff] }
  0x1e   : > { %2799 = vmatprep.subr.msk.mxu0 %vm241_vm0, %v227_v10  ;;  %v588_v27 = vld [vmem:[%s3340_s20 + $0x6] sm:$0xff]  ;;  %v589_v29 = vld [vmem:[%s3340_s20 + $0xe] sm:$0x1f]  ;;  %v2539_v55 = vld [vmem:[%s3340_s20 + $0x21] sm:$0x1f] }
  0x1f   : > { %v2544_v49 = vld [vmem:[%s3340_s20 + $0x22] sm:$0x1f]  ;;  %v2583_v34 = vld [vmem:[%s3340_s20 + $0x3b] sm:$0x1f] }
  0x20   : > { %v2555_v61 = vld [vmem:[%s3340_s20 + $0x23] sm:$0x1f]  ;;  %v2598_v35 = vld [vmem:[%s3340_s20 + $0x35] sm:$0xff] }
  0x21   : > { %2800 = vmatpush3.msk.msra.mxu0 %vm241_vm0, %v227_v10  ;;  %v2563_v3 = vld [vmem:[%s3340_s20 + $0x24] sm:$0x1f]  ;;  %v759_v7 = vld [vmem:[%s3500_s8] sm:$0xf] }
  0x22   : > { %3003 = vmatprep.subr.bf16.mxu0 %v3002_v13  ;;  %v2570_v4 = vld [vmem:[%s3340_s20 + $0x1d] sm:$0xff]  ;;  %v2571_v6 = vld [vmem:[%s3340_s20 + $0x25] sm:$0x1f] }
  0x23   : > { %v758_v9 = vld [vmem:[%s3736_s2] sm:$0xf] }
  0x24   : > { %2802 = vmatmul.mubr.msk.f32.vlgmr.msra.gmra.mrb[0].mxu0 %vm234_vm1, %v224_v14  ;;  %v2633_v1 = vld [vmem:[%s3737_s3 + $0x180] sm:$0xff] }
  0x25   : > { %3005 = vmatpush3.bf16.msra.mxu0 %v3002_v13  ;;  %2810 = vmatprep.mubr.msk.f32.mxu0 %vm234_vm1, %v404_v15  ;;  %v2589_v15 = vld [vmem:[%s3737_s3 + $0x108] sm:$0xff] }
  0x26   : > { %2808 = vmatprep.subr.msk.mxu0 %vm241_vm0, %v2520_v16 }
  0x29   : > { %2809 = vmatpush3.msk.msra.mxu0 %vm241_vm0, %v2520_v16  ;;  %v2590_v16 = vld [vmem:[%s3737_s3 + $0x110] sm:$0xff] }
  0x2a   : > { %3007 = vmatprep.subr.bf16.mxu0 %v3006_v19 }
  0x2c   : > { %2811 = vmatmul.mubr.msk.f32.vlgmr.msra.gmra.mrb[0].mxu0 %vm234_vm1, %v405_v20 }
  0x2d   : > { %3009 = vmatpush3.bf16.msra.mxu0 %v3006_v19  ;;  %2819 = vmatprep.mubr.msk.f32.mxu0 %vm234_vm1, %v496_v21  ;;  %v3042_v19 = vpack.c.bf16 %v2590_v16, %v2589_v15  ;;  %v2587_v21 = vld [vmem:[%s3340_s20 + $0x34] sm:$0xff]  ;;  %v2645_v16 = vld [vmem:[%s3737_s3 + $0x1a0] sm:$0xff] }
  0x2e   : > { %2817 = vmatprep.subr.msk.mxu0 %vm241_vm0, %v2526_v22  ;;  %v2644_v15 = vld [vmem:[%s3737_s3 + $0x198] sm:$0xff] }
  0x31   : > { %2818 = vmatpush3.msk.msra.mxu0 %vm241_vm0, %v2526_v22  ;;  %v2591_v22 = vld [vmem:[%s3737_s3 + $0x118] sm:$0xf] }
  0x32   : > { %3011 = vmatprep.subr.bf16.mxu0 %v3010_v25 }
  0x34   : > { %2820 = vmatmul.mubr.msk.f32.vlgmr.msra.gmra.mrb[0].mxu0 %vm234_vm1, %v497_v26  ;;  %v2588_v26 = vld [vmem:[%s3340_s20 + $0x3c] sm:$0x1f] }
  0x35   : > { %3013 = vmatpush3.bf16.msra.mxu0 %v3010_v25  ;;  %2828 = vmatprep.mubr.msk.f32.mxu0 %vm234_vm1, %v588_v27  ;;  %v3046_v25 = vpack.c.bf16 %v2585_v24, %v2584_v23  ;;  %v2582_v27 = vld [vmem:[%s3340_s20 + $0x33] sm:$0xff] }
  0x36   : > { %2826 = vmatprep.subr.msk.mxu0 %vm241_vm0, %v2532_v28  ;;  %v2643_v24 = vld [vmem:[%s3340_s20 + $0x52] sm:$0x1f] }
  0x39   : > { %2827 = vmatpush3.msk.msra.mxu0 %vm241_vm0, %v2532_v28  ;;  %v2586_v28 = vld [vmem:[%s3737_s3 + $0x100] sm:$0xf] }
  0x3a   : > { %3038 = vmatprep.subr.bf16.mxu0 %v3238_v30 }
  0x3c   : > { %2829 = vmatmul.mubr.msk.f32.vlgmr.msra.gmra.mrb[0].mxu0 %vm234_vm1, %v589_v29  ;;  %v2600_v29 = vld [vmem:[%s3737_s3 + $0x120] sm:$0xff] }
  0x3d   : > { %2887 = vmatprep.mubr.msk.f32.mxu0 %vm3239_vm2, %v3240_v31  ;;  %v3050_v33 = vpack.c.bf16 %v2601_v32, %v2600_v29  ;;  %v2651_v32 = vld [vmem:[%s3340_s20 + $0x53] sm:$0x1f] }
 0x10f   : > { %v2830_v38 = vpop.f32.mrb[0].mxu0 }
 0x110   : > { %v669_v39 = vpop.f32.mrb[1].mxu0 }
 0x111   : > { %v3015_v42 = vpack.c.bf16 %v2830_v38, %v669_v39  ;;  %v2609_v38 = vld [vmem:[%s3737_s3 + $0x140] sm:$0xff] }
 0x112   : > { %v3054_v39 = vpack.c.bf16 %v2609_v38, %v2608_v37 }
 0x113   : > { %3017 = vmatpush3.bf16.msk.msra.mxu1 %vm3413_vm5, %v3015_v42  ;;  %v2606_v42 = vld [vmem:[%s3340_s20 + $0x36] sm:$0xff] }
 0x114   : > { %3019 = vmatprep.subr.bf16.mxu1 %v3018_v41 }
 0x116   : > { %2836 = vmatmul.mubr.msk.f32.vlgmr.msra.gmra.mrb[0].mxu1 %vm680_vm7, %v3420_v43 }
 0x117   : > { %3021 = vmatpush3.bf16.msra.mxu1 %v3018_v41  ;;  %2844 = vmatprep.mubr.msk.f32.mxu1 %vm234_vm1, %v2543_v44  ;;  %v2599_v41 = vld [vmem:[%s3340_s20 + $0x3d] sm:$0x1f]  ;;  %v2610_v44 = vld [vmem:[%s3737_s3 + $0x148] sm:$0xf] }
 0x118   : > { %2842 = vmatprep.subr.msk.mxu1 %vm241_vm0, %v2547_v45 }
 0x11b   : > { %2843 = vmatpush3.msk.msra.mxu1 %vm241_vm0, %v2547_v45  ;;  %v2616_v45 = vld [vmem:[%s3737_s3 + $0x150] sm:$0xff] }
 0x11c   : > { %2845 = vmatmul.mubr.msk.f32.vlgmr.msra.gmra.mrb[2].mxu1 %vm234_vm1, %v2544_v49  ;;  %3023 = vmatprep.subr.bf16.mxu1 %v3022_v48  ;;  %v3058_v47 = vpack.c.bf16 %v2617_v46, %v2616_v45  ;;  %v2614_v49 = vld [vmem:[%s3340_s20 + $0x37] sm:$0xff]  ;;  %v2625_v45 = vld [vmem:[%s3500_s8 + $0x8] sm:$0xf] }
 0x11d   : > { %3025 = vmatpush3.bf16.msra.mxu1 %v3022_v48  ;;  %2853 = vmatprep.mubr.msk.f32.mxu1 %vm234_vm1, %v2538_v50  ;;  %v2607_v48 = vld [vmem:[%s3340_s20 + $0x3e] sm:$0x1f] }
 0x11e   : > { %2851 = vmatprep.subr.msk.mxu1 %vm241_vm0, %v2542_v51  ;;  %v2618_v50 = vld [vmem:[%s3737_s3 + $0x160] sm:$0xf] }
 0x121   : > { %2852 = vmatpush3.msk.msra.mxu1 %vm241_vm0, %v2542_v51  ;;  %v2615_v51 = vld [vmem:[%s3340_s20 + $0x3f] sm:$0x1f] }
 0x122   : > { %3027 = vmatprep.subr.bf16.mxu1 %v3026_v54 }
 0x124   : > { %2854 = vmatmul.mubr.msk.f32.vlgmr.msra.gmra.mrb[2].mxu1 %vm234_vm1, %v2539_v55 }
 0x125   : > { %3029 = vmatpush3.bf16.msra.mxu1 %v3026_v54  ;;  %2862 = vmatprep.mubr.msk.f32.mxu1 %vm234_vm1, %v2554_v56 }
 0x126   : > { %2860 = vmatprep.subr.msk.mxu1 %vm241_vm0, %v2558_v57 }
 0x129   : > { %2861 = vmatpush3.msk.msra.mxu1 %vm241_vm0, %v2558_v57 }
 0x12a   : > { %3031 = vmatprep.subr.bf16.mxu1 %v3030_v60 }
 0x12c   : > { %2863 = vmatmul.mubr.msk.f32.vlgmr.msra.gmra.mrb[2].mxu1 %vm234_vm1, %v2555_v61 }
 0x12d   : > { %3033 = vmatpush3.bf16.msra.mxu1 %v3030_v60  ;;  %2871 = vmatprep.mubr.msk.f32.mxu1 %vm234_vm1, %v2562_v62 }
 0x12e   : > { %2869 = vmatprep.subr.msk.mxu1 %vm241_vm0, %v2566_v63 }
 0x131   : > { %2870 = vmatpush3.msk.msra.mxu1 %vm241_vm0, %v2566_v63 }
 0x132   : > { %3035 = vmatprep.subr.bf16.mxu1 %v3034_v2 }
 0x134   : > { %2872 = vmatmul.mubr.msk.f32.vlgmr.msra.gmra.mrb[2].mxu1 %vm234_vm1, %v2563_v3 }
 0x135   : > { %3037 = vmatpush3.bf16.msra.mxu1 %v3034_v2  ;;  %2880 = vmatprep.mubr.msk.f32.mxu1 %vm234_vm1, %v2570_v4  ;;  %v2634_v2 = vld [vmem:[%s3737_s3 + $0x188] sm:$0xff] }
 0x136   : > { %2878 = vmatprep.subr.msk.mxu1 %vm241_vm0, %v2574_v5 }
 0x139   : > { %2879 = vmatpush3.msk.msra.mxu1 %vm241_vm0, %v2574_v5  ;;  %v3066_v5 = vpack.c.bf16 %v2634_v2, %v2633_v1 }
 0x13a   : > { %3062 = vmatprep.subr.bf16.mxu1 %v3238_v30 }
 0x13c   : > { %2881 = vmatmul.mubr.msk.f32.vlgmr.msra.gmra.mrb[2].mxu1 %vm234_vm1, %v2571_v6 }
 0x13d   : > { %2939 = vmatprep.mubr.msk.f32.mxu1 %vm3239_vm2, %v3240_v31 }
 0x1e9   : > { %v754_v8 = vpop.f32.mrb[0].mxu1 }
 0x1ea   : > { %v760_v10 = vsub.f32 %v754_v8, %v759_v7  ;;  %v2837_v11 = vpop.f32.mrb[1].mxu1  ;;  %v2631_v7 = vld [vmem:[%s3340_s20 + $0x49] sm:$0xff] }
 0x1eb   : > { %v2635_v8 = vld [vmem:[%s3737_s3 + $0x190] sm:$0xf] }
 0x1ec   : > { %v761_v12 = vmul.f32 %v760_v10, %v758_v9  ;;  %v2628_v9 = vld [vmem:[%s3737_s3 + $0x168] sm:$0xff]  ;;  %v2629_v10 = vld [vmem:[%s3737_s3 + $0x170] sm:$0xff] }
 0x1ed   : > { %v3070_v11 = vpack.c.bf16 %v2629_v10, %v2628_v9 }
 0x1ee   : > { %v762_v13 = vand.u32 2147483647, %v761_v12  ;;  %v2632_v12 = vld [vmem:[%s3340_s20 + $0x51] sm:$0x1f] }
 0x1f0   : > { %v764_v14 = vsel %vm763_vm8, %v762_v13, 0.0  ;;  %v2626_v13 = vld [vmem:[%s3340_s20 + $0x48] sm:$0xff] }
 0x1f1   : > { %765 = vadd.xlane.f32.xlu0 %v764_v14  ;;  %v2630_v14 = vld [vmem:[%s3737_s3 + $0x178] sm:$0xf] }
 0x20f   : > { %v2882_v17 = vpop.f32.mrb[2].mxu1 }
 0x210   : > { %v1221_v18 = vpop.f32.mrb[3].mxu1 }
 0x211   : > { %v3039_v20 = vpack.c.bf16 %v2882_v17, %v1221_v18  ;;  %v3074_v17 = vpack.c.bf16 %v2645_v16, %v2644_v15  ;;  %v2627_v18 = vld [vmem:[%s3340_s20 + $0x50] sm:$0x1f] }
 0x213   : > { %3041 = vmatpush3.bf16.msk.msra.mxu0 %vm3413_vm5, %v3039_v20  ;;  %v2646_v20 = vld [vmem:[%s3737_s3 + $0x1a8] sm:$0xf] }
 0x214   : > { %3043 = vmatprep.subr.bf16.mxu0 %v3042_v19 }
 0x216   : > { %2888 = vmatmul.mubr.msk.f32.vlgmr.msra.gmra.mrb[2].mxu0 %vm680_vm7, %v3420_v43 }
 0x217   : > { %3045 = vmatpush3.bf16.msra.mxu0 %v3042_v19  ;;  %2896 = vmatprep.mubr.msk.f32.mxu0 %vm234_vm1, %v2587_v21  ;;  %v2642_v19 = vld [vmem:[%s3340_s20 + $0x4a] sm:$0xff] }
 0x218   : > { %2894 = vmatprep.subr.msk.mxu0 %vm241_vm0, %v2591_v22  ;;  %v2652_v21 = vld [vmem:[%s3737_s3 + $0x1b0] sm:$0xff] }
 0x21b   : > { %2895 = vmatpush3.msk.msra.mxu0 %vm241_vm0, %v2591_v22  ;;  %v2653_v22 = vld [vmem:[%s3737_s3 + $0x1b8] sm:$0xff] }
 0x21c   : > { %2897 = vmatmul.mubr.msk.f32.vlgmr.msra.gmra.mrb[4].mxu0 %vm234_vm1, %v2588_v26  ;;  %3047 = vmatprep.subr.bf16.mxu0 %v3046_v25  ;;  %v3078_v23 = vpack.c.bf16 %v2653_v22, %v2652_v21  ;;  %v2654_v26 = vld [vmem:[%s3737_s3 + $0x1c0] sm:$0xf] }
 0x21d   : > { %3049 = vmatpush3.bf16.msra.mxu0 %v3046_v25  ;;  %2905 = vmatprep.mubr.msk.f32.mxu0 %vm234_vm1, %v2582_v27  ;;  %v2650_v25 = vld [vmem:[%s3340_s20 + $0x4b] sm:$0xff] }
 0x21e   : > { %2903 = vmatprep.subr.msk.mxu0 %vm241_vm0, %v2586_v28  ;;  %v2660_v27 = vld [vmem:[%s3737_s3 + $0x1c8] sm:$0xff] }
 0x221   : > { %2904 = vmatpush3.msk.msra.mxu0 %vm241_vm0, %v2586_v28  ;;  %v2661_v28 = vld [vmem:[%s3737_s3 + $0x1d0] sm:$0xff] }
 0x222   : > { %3051 = vmatprep.subr.bf16.mxu0 %v3050_v33  ;;  %v3082_v29 = vpack.c.bf16 %v2661_v28, %v2660_v27 }
 0x224   : > { %2906 = vmatmul.mubr.msk.f32.vlgmr.msra.gmra.mrb[4].mxu0 %vm234_vm1, %v2583_v34  ;;  %v2662_v34 = vld [vmem:[%s3737_s3 + $0x1d8] sm:$0xf] }
 0x225   : > { %3053 = vmatpush3.bf16.msra.mxu0 %v3050_v33  ;;  %2914 = vmatprep.mubr.msk.f32.mxu0 %vm234_vm1, %v2598_v35  ;;  %v2658_v33 = vld [vmem:[%s3340_s20 + $0x4c] sm:$0xff]  ;;  %v2659_v35 = vld [vmem:[%s3340_s20 + $0x54] sm:$0x1f]  ;;  %s3174_s20 = scalar_lea.vmem %s3694_s6, 16 }
 0x226   : > { %2912 = vmatprep.subr.msk.mxu0 %vm241_vm0, %v2602_v36  ;;  %p3175_p11 = scmp.ne.s32.totalorder %s3694_s6, %s3174_s20 }
 0x228   : > { %p3176_p12 = pnand %p3175_p11, %p3306_p5 }
 0x229   : > { %2913 = vmatpush3.msk.msra.mxu0 %vm241_vm0, %v2602_v36 }
 0x22a   : > { %3055 = vmatprep.subr.bf16.mxu0 %v3054_v39  ;;  %p3177_p13 = pneg %p3176_p12 }
 0x22c   : > { %2915 = vmatmul.mubr.msk.f32.vlgmr.msra.gmra.mrb[4].mxu0 %vm234_vm1, %v2599_v41 }
 0x22d   : > { %3057 = vmatpush3.bf16.msra.mxu0 %v3054_v39  ;;  %2923 = vmatprep.mubr.msk.f32.mxu0 %vm234_vm1, %v2606_v42 }
 0x22e   : > { %2921 = vmatprep.subr.msk.mxu0 %vm241_vm0, %v2610_v44 }
 0x231   : > { %2922 = vmatpush3.msk.msra.mxu0 %vm241_vm0, %v2610_v44 }
 0x232   : > { %3059 = vmatprep.subr.bf16.mxu0 %v3058_v47 }
 0x234   : > { %2924 = vmatmul.mubr.msk.f32.vlgmr.msra.gmra.mrb[4].mxu0 %vm234_vm1, %v2607_v48 }
 0x235   : > { %3061 = vmatpush3.bf16.msra.mxu0 %v3058_v47  ;;  %2932 = vmatprep.mubr.msk.f32.mxu0 %vm234_vm1, %v2614_v49  ;;  %v2624_v47 = vld [vmem:[%s3736_s2 + $0x8] sm:$0xf] }
 0x236   : > { %2930 = vmatprep.subr.msk.mxu0 %vm241_vm0, %v2618_v50 }
 0x239   : > { %2931 = vmatpush3.msk.msra.mxu0 %vm241_vm0, %v2618_v50 }
 0x23a   : > { %3086 = vmatprep.subr.bf16.mxu0 %v3238_v30  ;;  %v2580_v30 = vld [vmem:[%s3736_s2 + $0x4] sm:$0xf] }
 0x23c   : > { %2933 = vmatmul.mubr.msk.f32.vlgmr.msra.gmra.mrb[4].mxu0 %vm234_vm1, %v2615_v51 }
 0x23d   : > { %2991 = vmatprep.mubr.msk.f32.mxu0 %vm3239_vm2, %v3240_v31 }
 0x27e   : > { %v766_v52 = vpop.xlane.xlu0 %765 }
 0x27f   : > { %v767_v53 = vrot.slane %v766_v52, 4 }
 0x281   : > { %v768_v54 = vadd.f32 %v767_v53, %v766_v52 }
 0x283   : > { %v769_v55 = vrot.slane %v768_v54, 2 }
 0x285   : > { %v770_v56 = vadd.f32 %v769_v55, %v768_v54 }
 0x287   : > { %v771_v57 = vrot.slane %v770_v56, 1 }
 0x289   : > { %v772_v58 = vadd.f32 %v771_v57, %v770_v56 }
 0x28b   : > { %3123 = vpush %v772_v58 }
 0x2e9   : > { %v1301_v60 = vpop.f32.mrb[2].mxu0 }
 0x2ea   : > { %v1309_v61 = vsub.f32 %v1301_v60, %v2581_v59  ;;  %v2889_v62 = vpop.f32.mrb[3].mxu0 }
 0x2eb   : > { %v2669_v62 = vld [vmem:[%s3500_s8 + $0xc] sm:$0xf]  ;;  %s3124_s8 = spop %3123 }
 0x2ec   : > { %v1310_v63 = vmul.f32 %v2580_v30, %v1309_v61 }
 0x2ee   : > { %v1311_v0 = vand.u32 2147483647, %v1310_v63 }
 0x2f0   : > { %v1312_v31 = vsel %vm763_vm8, %v1311_v0, 0.0  ;;  %v2668_v0 = vld [vmem:[%s3736_s2 + $0xc] sm:$0xf] }
 0x2f1   : > { %1313 = vadd.xlane.f32.xlu0 %v1312_v31 }
 0x30f   : > { %v2934_v3 = vpop.f32.mrb[4].mxu0 }
 0x310   : > { %v1769_v4 = vpop.f32.mrb[5].mxu0 }
 0x311   : > { %v3063_v6 = vpack.c.bf16 %v2934_v3, %v1769_v4 }
 0x313   : > { %3065 = vmatpush3.bf16.msk.msra.mxu1 %vm3413_vm5, %v3063_v6 }
 0x314   : > { %3067 = vmatprep.subr.bf16.mxu1 %v3066_v5 }
 0x316   : > { %2940 = vmatmul.mubr.msk.f32.vlgmr.msra.gmra.mrb[4].mxu1 %vm680_vm7, %v3420_v43 }
 0x317   : > { %3069 = vmatpush3.bf16.msra.mxu1 %v3066_v5  ;;  %2948 = vmatprep.mubr.msk.f32.mxu1 %vm234_vm1, %v2631_v7 }
 0x318   : > { %2946 = vmatprep.subr.msk.mxu1 %vm241_vm0, %v2635_v8 }
 0x31b   : > { %2947 = vmatpush3.msk.msra.mxu1 %vm241_vm0, %v2635_v8 }
 0x31c   : > { %2949 = vmatmul.mubr.msk.f32.vlgmr.msra.gmra.mrb[6].mxu1 %vm234_vm1, %v2632_v12  ;;  %3071 = vmatprep.subr.bf16.mxu1 %v3070_v11 }
 0x31d   : > { %3073 = vmatpush3.bf16.msra.mxu1 %v3070_v11  ;;  %2957 = vmatprep.mubr.msk.f32.mxu1 %vm234_vm1, %v2626_v13 }
 0x31e   : > { %2955 = vmatprep.subr.msk.mxu1 %vm241_vm0, %v2630_v14 }
 0x321   : > { %2956 = vmatpush3.msk.msra.mxu1 %vm241_vm0, %v2630_v14 }
 0x322   : > { %3075 = vmatprep.subr.bf16.mxu1 %v3074_v17 }
 0x324   : > { %2958 = vmatmul.mubr.msk.f32.vlgmr.msra.gmra.mrb[6].mxu1 %vm234_vm1, %v2627_v18 }
 0x325   : > { %3077 = vmatpush3.bf16.msra.mxu1 %v3074_v17  ;;  %2966 = vmatprep.mubr.msk.f32.mxu1 %vm234_vm1, %v2642_v19 }
 0x326   : > { %2964 = vmatprep.subr.msk.mxu1 %vm241_vm0, %v2646_v20 }
 0x329   : > { %2965 = vmatpush3.msk.msra.mxu1 %vm241_vm0, %v2646_v20 }
 0x32a   : > { %3079 = vmatprep.subr.bf16.mxu1 %v3078_v23 }
 0x32c   : > { %2967 = vmatmul.mubr.msk.f32.vlgmr.msra.gmra.mrb[6].mxu1 %vm234_vm1, %v2643_v24 }
 0x32d   : > { %3081 = vmatpush3.bf16.msra.mxu1 %v3078_v23  ;;  %2975 = vmatprep.mubr.msk.f32.mxu1 %vm234_vm1, %v2650_v25 }
 0x32e   : > { %2973 = vmatprep.subr.msk.mxu1 %vm241_vm0, %v2654_v26 }
 0x331   : > { %2974 = vmatpush3.msk.msra.mxu1 %vm241_vm0, %v2654_v26 }
 0x332   : > { %3083 = vmatprep.subr.bf16.mxu1 %v3082_v29 }
 0x334   : > { %2976 = vmatmul.mubr.msk.f32.vlgmr.msra.gmra.mrb[6].mxu1 %vm234_vm1, %v2651_v32 }
 0x335   : > { %3085 = vmatpush3.bf16.msra.mxu1 %v3082_v29  ;;  %2984 = vmatprep.mubr.msk.f32.mxu1 %vm234_vm1, %v2658_v33 }
 0x336   : > { %2982 = vmatprep.subr.msk.mxu1 %vm241_vm0, %v2662_v34 }
 0x339   : > { %2983 = vmatpush3.msk.msra.mxu1 %vm241_vm0, %v2662_v34 }
 0x33c   : > { %2985 = vmatmul.mubr.msk.f32.vlgmr.msra.gmra.mrb[6].mxu1 %vm234_vm1, %v2659_v35 }
 0x37e   : > { %v1314_v36 = vpop.xlane.xlu0 %1313 }
 0x37f   : > { %v1315_v37 = vrot.slane %v1314_v36, 4 }
 0x381   : > { %v1316_v38 = vadd.f32 %v1315_v37, %v1314_v36 }
 0x383   : > { %v1317_v39 = vrot.slane %v1316_v38, 2 }
 0x385   : > { %v1318_v41 = vadd.f32 %v1317_v39, %v1316_v38 }
 0x387   : > { %v1319_v42 = vrot.slane %v1318_v41, 1 }
 0x389   : > { %v1320_v44 = vadd.f32 %v1319_v42, %v1318_v41 }
 0x38b   : > { %3125 = vpush %v1320_v44 }
 0x3bc   : > { %s3126_s22 = spop %3125 }
 0x3bd   : > { %s1322_s28 = sadd.f32 %s3126_s22, %s3124_s8  ;;  %s3180_s8 = scalar_lea.vmem %s3179_s14, 32 }
 0x3be   : > { %p3182_p1 = scmp.lt.s32.totalorder %s3180_s8, %s3174_s20 }
 0x3c0   : > { %p3183_p2 = por %p3182_p1, %p3181_p0 }
 0x3c2   : > { %p3184_p3 = pnand %p3183_p2, %p3177_p13 }
 0x3e9   : > { %v1849_v46 = vpop.f32.mrb[4].mxu1 }
 0x3ea   : > { %v1857_v48 = vsub.f32 %v1849_v46, %v2625_v45  ;;  %v2941_v49 = vpop.f32.mrb[5].mxu1 }
 0x3ec   : > { %v1858_v50 = vmul.f32 %v2624_v47, %v1857_v48 }
 0x3ee   : > { %v1859_v51 = vand.u32 2147483647, %v1858_v50 }
 0x3f0   : > { %v1860_v52 = vsel %vm763_vm8, %v1859_v51, 0.0 }
 0x3f1   : > { %1861 = vadd.xlane.f32.xlu1 %v1860_v52 }
 0x40f   : > { %v2986_v53 = vpop.f32.mrb[6].mxu1 }
 0x410   : > { %v2317_v54 = vpop.f32.mrb[7].mxu1 }
 0x411   : > { %v3087_v55 = vpack.c.bf16 %v2986_v53, %v2317_v54 }
 0x413   : > { %3089 = vmatpush3.bf16.msk.msra.mxu0 %vm3413_vm5, %v3087_v55 }
 0x416   : > { %2992 = vmatmul.mubr.msk.f32.vlgmr.msra.gmra.mrb[6].mxu0 %vm680_vm7, %v3420_v43 }
 0x47e   : > { %v1862_v56 = vpop.xlane.xlu1 %1861 }
 0x47f   : > { %v1863_v57 = vrot.slane %v1862_v56, 4 }
 0x481   : > { %v1864_v58 = vadd.f32 %v1863_v57, %v1862_v56 }
 0x483   : > { %v1865_v59 = vrot.slane %v1864_v58, 2 }
 0x485   : > { %v1866_v60 = vadd.f32 %v1865_v59, %v1864_v58 }
 0x487   : > { %v1867_v30 = vrot.slane %v1866_v60, 1 }
 0x489   : > { %v1868_v61 = vadd.f32 %v1867_v30, %v1866_v60 }
 0x48b   : > { %3127 = vpush %v1868_v61 }
 0x4bc   : > { %s3128_s27 = spop %3127 }
 0x4bd   : > { %s1870_s29 = sadd.f32 %s3128_s27, %s1322_s28 }
 0x4e9   : > { %v2397_v63 = vpop.f32.mrb[6].mxu0 }
 0x4ea   : > { %v2405_v31 = vsub.f32 %v2397_v63, %v2669_v62  ;;  %v2993_v40 = vpop.f32.mrb[7].mxu0 }
 0x4ec   : > { %v2406_v1 = vmul.f32 %v2668_v0, %v2405_v31 }
 0x4ee   : > { %v2407_v2 = vand.u32 2147483647, %v2406_v1 }
 0x4f0   : > { %v2408_v43 = vsel %vm763_vm8, %v2407_v2, 0.0 }
 0x4f1   : > { %2409 = vadd.xlane.f32.xlu1 %v2408_v43 }
 0x57e   : > { %v2410_v3 = vpop.xlane.xlu1 %2409 }
 0x57f   : > { %v2411_v4 = vrot.slane %v2410_v3, 4 }
 0x581   : > { %v2412_v5 = vadd.f32 %v2411_v4, %v2410_v3 }
 0x583   : > { %v2413_v6 = vrot.slane %v2412_v5, 2 }
 0x585   : > { %v2414_v7 = vadd.f32 %v2413_v6, %v2412_v5 }
 0x587   : > { %v2415_v8 = vrot.slane %v2414_v7, 1 }
 0x589   : > { %v2416_v9 = vadd.f32 %v2415_v8, %v2414_v7 }
 0x58b   : > { %3129 = vpush %v2416_v9 }
 0x5bc   : > { %s3130_s9 = spop %3129 }
 0x5bd   : > { %s2418_s10 = sadd.f32 %s3130_s9, %s1870_s29 }
 0x5bf   : > { %v2419_v10 = vstv %s2418_s10 }
 0x5c0   : > { %2420 = vst [vmem:[%s204_s5] sm:$0x1] %v2419_v10 }
 0x5c1   : > { %3187 = shalt.err (!%p3184_p3)
}
 0x5c2   : > { %s3188_s22 = scalar_lea.hbm %s3692_s12, 16  ;;  %s3192_s28 = scalar_lea.hbm %s3738_s4, 32 }
 0x5c3   : > { %p3189_p4 = scmp.ne.s32.totalorder %s3692_s12, %s3188_s22  ;;  %p3193_p9 = scmp.lt.u32.totalorder %s3692_s12, %s3738_s4 }
 0x5c4   : > { %p3194_p10 = scmp.lt.u32.totalorder %s3192_s28, %s3188_s22  ;;  %p3196_p12 = scmp.lt.u32.totalorder %s3188_s22, %s3692_s12 }
 0x5c5   : > { %p3190_p7 = pnand %p3189_p4, %p3306_p5 }
 0x5c6   : > { %p3195_p11 = por %p3194_p10, %p3193_p9 }
 0x5c7   : > { %p3191_p8 = pneg %p3190_p7 }
 0x5c8   : > { %p3197_p13 = por %p3196_p12, %p3195_p11 }
 0x5ca   : > { %p3198_p0 = pnand %p3197_p13, %p3191_p8 }
 0x5cc   : > { %3201 = shalt.err (!%p3198_p0)
}
 0x5cd   : > { %3131 = dma.vmem_to_hbm [thread:$0]  (%p3306_p5), %s3694_s6, 16, %s3692_s12, %s2422_s13  }
 0x5ce PF: > { %p3137_p1 = scmp.ge.s32.totalorder %s3236_s18, 2  ;;  %s2446_s5 = sand.u32 1, %s3224_s15  }
 0x5cf   : > { %s2447_s9 = scalar_lea.sflag [#allocation3], %s2446_s5 }
 0x5d0   : > { %p3134_p2 = pnand %p3137_p1, %p3310_p6 }
 0x5d2   : > { %3219 = dma.done.wait (!%p3134_p2), %s2447_s9, 16  }
 0x5d3   : > { %3221 = vsyncadd (!%p3134_p2), %s2447_s9, 4294967280  ;;  %p14_p3 = scmp.ge.s32.totalorder %s3293_s21, 4   ;;  %s3743_s15 = smov %s3228_s16 }
 0x5d4   : > { %s3744_s16 = smov %s3232_s17  ;;  %s3745_s17 = smov %s3304_s24 }
 0x5d5   : > { %s3746_s18 = smov %s3293_s21  ;;  %16 = sbr.rel (!%p14_p3) target bundleno = 3 (0x3), region = 102 }
 0x5dc   :  { %2451 = vsyncpa [#allocation3], 1 }
 0x5dd   :  { %2453 = vsyncpa [#allocation3 + $0x1], 1 }

</bundles_post_ra>
